<compile_context>
chip_gen: v6e
topology: v6e:2x2x1
jax: 0.10.0
libtpu: 0.0.40
codegen_flags: <defaults>
</compile_context>

<pallas_src>
import jax
import jax.numpy as jnp
from jax.experimental import pallas as pl
from jax.experimental.pallas import tpu as pltpu


# ----------------------------- in-kernel helpers -----------------------------

def _merge_batch(a):
    """(b, r, c) -> (b*r, c) using leading-dim indexing + sublane concat."""
    b = a.shape[0]
    if b == 1:
        return a[0]
    return jnp.concatenate([a[i] for i in range(b)], axis=0)


def _split_batch(a, b):
    """(b*r, c) -> (b, r, c) using static slices + stack along a new leading dim."""
    if b == 1:
        return a[None]
    r = a.shape[0] // b
    return jnp.stack([a[i * r:(i + 1) * r] for i in range(b)], axis=0)


# ------------------------------- fused kernel --------------------------------

def _fused_net_kernel(x_ref, t1_ref, b1_ref, t2_ref, b2_ref,
                      wf1_ref, bf1_ref, wf2_ref, bf2_ref, o_ref):
    b = x_ref.shape[1]
    x = x_ref[0]                                   # (b, 14, 56): 28x28 image, rows paired

    # ---- conv1 (5x5, 1->10) + full 2x2 max-pool as ONE matmul --------------
    # X1[(bb,ii), e*28+w] = x_img[bb, 2*ii+e, w]    (ii = pooled row, e in [0,6))
    x1 = jnp.concatenate([x[:, q:q + 12, :] for q in range(3)], axis=-1)   # (b, 12, 168)
    x1 = _merge_batch(x1)                                                  # (b*12, 168)
    y1 = jnp.dot(x1, t1_ref[...], preferred_element_type=jnp.float32)      # (b*12, 480)
    # columns = (pool_row_phase, pool_col_phase, jj, co): pool = max of 4 lane slices
    p1 = jnp.maximum(jnp.maximum(y1[:, 0:120], y1[:, 120:240]),
                     jnp.maximum(y1[:, 240:360], y1[:, 360:480]))          # (b*12, 120)
    a1 = jnp.maximum(p1 + b1_ref[...], 0.0)          # bias+relu commute with max-pool
    a1 = _split_batch(a1, b)                                               # (b, 12, 120)

    # ---- conv2 (5x5, 10->20) + W-phase of its 2x2 max-pool ------------------
    # X2[(bb,i), di*120 + w*10 + ci] = pooled1[bb, i+di, w, ci]
    x2 = jnp.concatenate([a1[:, d:d + 8, :] for d in range(5)], axis=-1)   # (b, 8, 600)
    x2 = _merge_batch(x2)                                                  # (b*8, 600)
    y2 = jnp.dot(x2, t2_ref[...], preferred_element_type=jnp.float32)      # (b*8, 160)
    p2 = jnp.maximum(y2[:, 0:80], y2[:, 80:160])                           # (b*8, 80)
    a2 = jnp.maximum(p2 + b2_ref[...], 0.0)
    a2 = _split_batch(a2, b)                                               # (b, 8, 80)
    # TODO(synk): Dropout2d / F.dropout are identities in eval mode; training-mode dropout not implemented.

    # ---- H-phase of pool2 fused with the flatten that feeds fc1 -------------
    # result columns = h*80 + w*20 + c  (fc1 weight rows pre-permuted to match)
    h = jnp.concatenate(
        [jnp.maximum(a2[:, 2 * r, :], a2[:, 2 * r + 1, :]) for r in range(4)],
        axis=-1)                                                           # (b, 320)

    # ---- fc1 -> relu -> fc2 -> log_softmax ----------------------------------
    h = jnp.maximum(
        jnp.dot(h, wf1_ref[...], preferred_element_type=jnp.float32) + bf1_ref[...],
        0.0)                                                               # (b, 50)
    logits = jnp.dot(h, wf2_ref[...], preferred_element_type=jnp.float32) + bf2_ref[...]

    m = jnp.max(logits, axis=-1, keepdims=True)
    z = logits - m
    lse = jnp.log(jnp.sum(jnp.exp(z), axis=-1, keepdims=True))
    o_ref[0] = z - lse


# --------------------------- one-time weight repack ---------------------------

def prepare_params(params):
    """Repack torch-layout weights into kernel-ready banded/permuted matrices.

    Call once (outside jit); zero per-forward cost afterwards.
    """
    f32 = jnp.float32

    # conv1 banded matrix T1: (6*28, 2*2*12*10) = (168, 480)
    # T1[e*28+w, il*240+jl*120+jj*10+co] = conv1_w[co,0,e-il, w-(2jj+jl)] (when valid)
    w1 = jnp.transpose(params["conv1_w"].astype(f32), (2, 3, 1, 0)).reshape(5, 5, 10)
    t1 = jnp.zeros((6, 28, 2, 2, 12, 10), f32)       # (e, w, il, jl, jj, co)
    jj12 = jnp.arange(12)
    for di in range(5):
        for dj in range(5):
            for il in range(2):
                for jl in range(2):
                    t1 = t1.at[il + di, 2 * jj12 + jl + dj, il, jl, jj12, :].set(w1[di, dj, :])
    t1 = t1.reshape(168, 480)

    # conv2 banded matrix T2: (5*12*10, 2*4*20) = (600, 160)
    # T2[di*120+w*10+ci, jl*80+jj*20+co] = conv2_w[co,ci,di, w-(2jj+jl)] (when valid)
    w2 = jnp.transpose(params["conv2_w"].astype(f32), (2, 3, 1, 0))   # (di, dj, ci, co)
    t2 = jnp.zeros((5, 12, 2, 4, 10, 20), f32)       # (di, w, jl, jj, ci, co)
    jj4 = jnp.arange(4)
    for di in range(5):
        for dj in range(5):
            for jl in range(2):
                t2 = t2.at[di, 2 * jj4 + jl + dj, jl, jj4, :, :].set(w2[di, dj])
    t2 = jnp.transpose(t2, (0, 1, 4, 2, 3, 5)).reshape(600, 160)

    # fc1: permute input features from torch's NCHW flatten (c*16+h*4+w) to the
    # kernel's (h*80+w*20+c) order; store as (in, out).
    wf1 = jnp.transpose(params["fc1_w"].astype(f32).reshape(50, 20, 4, 4),
                        (2, 3, 1, 0)).reshape(320, 50)
    wf2 = jnp.transpose(params["fc2_w"].astype(f32), (1, 0))          # (50, 10)

    return {
        "t1": t1,
        "b1": jnp.tile(params["conv1_b"].astype(f32), 12).reshape(1, 120),
        "t2": t2,
        "b2": jnp.tile(params["conv2_b"].astype(f32), 4).reshape(1, 80),
        "wf1": wf1, "bf1": params["fc1_b"].astype(f32).reshape(1, 50),
        "wf2": wf2, "bf2": params["fc2_b"].astype(f32).reshape(1, 10),
    }


# --------------------------------- forward -----------------------------------

def net_forward(prep, x_nchw):
    """Fused forward of Net (eval mode). x_nchw: (N, 1, 28, 28) -> (N, 10) log-probs."""
    n = x_nchw.shape[0]
    # Free (row-major) reshape: pair image rows so the pool-row phase can be
    # folded into the conv1 matmul columns.  Cin == 1.
    x = x_nchw.reshape(n, 14, 56).astype(jnp.float32)

    # Batch tiling: >=2 grid steps whenever possible (keeps both v7x cores busy),
    # capped at 8 images/step so per-step VMEM stays small and batch-independent.
    b_tile = 1 if n <= 1 else min(8, (n + 1) // 2)
    n_pad = pl.cdiv(n, b_tile) * b_tile
    if n_pad != n:
        x = jnp.pad(x, ((0, n_pad - n), (0, 0), (0, 0)))
    t = n_pad // b_tile
    x = x.reshape(t, b_tile, 14, 56)

    out = pl.pallas_call(
        _fused_net_kernel,
        out_shape=jax.ShapeDtypeStruct((t, b_tile, 10), jnp.float32),
        grid_spec=pltpu.PrefetchScalarGridSpec(
            num_scalar_prefetch=0,
            grid=(t,),
            in_specs=[
                pl.BlockSpec((1, b_tile, 14, 56), lambda i: (i, 0, 0, 0)),
                pl.BlockSpec((168, 480), lambda i: (0, 0)),
                pl.BlockSpec((1, 120), lambda i: (0, 0)),
                pl.BlockSpec((600, 160), lambda i: (0, 0)),
                pl.BlockSpec((1, 80), lambda i: (0, 0)),
                pl.BlockSpec((320, 50), lambda i: (0, 0)),
                pl.BlockSpec((1, 50), lambda i: (0, 0)),
                pl.BlockSpec((50, 10), lambda i: (0, 0)),
                pl.BlockSpec((1, 10), lambda i: (0, 0)),
            ],
            out_specs=pl.BlockSpec((1, b_tile, 10), lambda i: (i, 0, 0)),
        ),
        compiler_params=pltpu.CompilerParams(
            dimension_semantics=("parallel",),
            vmem_limit_bytes=32 * 1024 * 1024,
        ),
    )(x, prep["t1"], prep["b1"], prep["t2"], prep["b2"],
      prep["wf1"], prep["bf1"], prep["wf2"], prep["bf2"])

    return out.reshape(n_pad, 10)[:n]


# --------------------------- params / reference / main ------------------------

def init_params(key):
    ks = jax.random.split(key, 8)

    def u(k, shape, fan_in):
        bound = 1.0 / jnp.sqrt(fan_in)
        return jax.random.uniform(k, shape, jnp.float32, -bound, bound)

    return {  # torch-native layouts
        "conv1_w": u(ks[0], (10, 1, 5, 5), 25),
        "conv1_b": u(ks[1], (10,), 25),
        "conv2_w": u(ks[2], (20, 10, 5, 5), 250),
        "conv2_b": u(ks[3], (20,), 250),
        "fc1_w": u(ks[4], (50, 320), 320),
        "fc1_b": u(ks[5], (50,), 320),
        "fc2_w": u(ks[6], (10, 50), 50),
        "fc2_b": u(ks[7], (10,), 50),
    }


def _reference_forward(params, x_nchw):
    """Pure-XLA reference (eval-mode Net) for correctness checking."""
    def pool2(y):
        return jnp.maximum(jnp.maximum(y[:, :, 0::2, 0::2], y[:, :, 0::2, 1::2]),
                           jnp.maximum(y[:, :, 1::2, 0::2], y[:, :, 1::2, 1::2]))

    x = x_nchw.astype(jnp.float32)
    y = jax.lax.conv_general_dilated(
        x, params["conv1_w"], window_strides=(1, 1), padding="VALID",
        dimension_numbers=("NCHW", "OIHW", "NCHW"), precision="highest")
    y = jnp.maximum(pool2(y + params["conv1_b"][None, :, None, None]), 0.0)
    y = jax.lax.conv_general_dilated(
        y, params["conv2_w"], window_strides=(1, 1), padding="VALID",
        dimension_numbers=("NCHW", "OIHW", "NCHW"), precision="highest")
    y = jnp.maximum(pool2(y + params["conv2_b"][None, :, None, None]), 0.0)
    y = y.reshape(y.shape[0], 320)
    y = jnp.maximum(jnp.dot(y, params["fc1_w"].T, precision="highest") + params["fc1_b"], 0.0)
    y = jnp.dot(y, params["fc2_w"].T, precision="highest") + params["fc2_b"]
    return jax.nn.log_softmax(y, axis=-1)


if __name__ == "__main__":
    key = jax.random.PRNGKey(0)
    k_param, k_x = jax.random.split(key)
    params = init_params(k_param)
    prep = prepare_params(params)            # one-time weight repack (outside jit)

    # MNIST-shaped input implied by fc1 (20 * 4 * 4 = 320): (batch=2, 1, 28, 28).
    x = jax.random.normal(k_x, (2, 1, 28, 28), dtype=jnp.float32)

    out = jax.jit(net_forward)(prep, x)
    out = jax.block_until_ready(out)
    assert out.shape == (2, 10)

    ref = _reference_forward(params, x)
    max_err = float(jnp.max(jnp.abs(out - ref)))
    assert jnp.allclose(out, ref, atol=2e-3, rtol=2e-3), max_err
    assert jnp.allclose(jnp.sum(jnp.exp(out), axis=-1), 1.0, atol=1e-4)
    print("KERNEL_OK")
</pallas_src>

<mosaic_0001>
module attributes {stable_mosaic.version = 11 : i64} {
  func.func @_fused_net_kernel(%arg0: i32, %arg1: memref<1x1x14x56xf32, #tpu.memory_space<vmem>>, %arg2: memref<168x480xf32, #tpu.memory_space<vmem>>, %arg3: memref<1x120xf32, #tpu.memory_space<vmem>>, %arg4: memref<600x160xf32, #tpu.memory_space<vmem>>, %arg5: memref<1x80xf32, #tpu.memory_space<vmem>>, %arg6: memref<320x50xf32, #tpu.memory_space<vmem>>, %arg7: memref<1x50xf32, #tpu.memory_space<vmem>>, %arg8: memref<50x10xf32, #tpu.memory_space<vmem>>, %arg9: memref<1x10xf32, #tpu.memory_space<vmem>>, %arg10: memref<1x1x10xf32, #tpu.memory_space<vmem>>) attributes {dimension_semantics = [#tpu.dimension_semantics<parallel>], iteration_bounds = array<i64: 2>, scalar_prefetch = 0 : i64, scratch_operands = 0 : i64, tpu.core_type = #tpu.core_type<tc>, window_params = [{transform_indices = @transform_0, window_bounds = array<i64: 1, 1, 14, 56>}, {pipeline_mode = #tpu.pipeline_mode<synchronous>, transform_indices = @transform_1, window_bounds = array<i64: 168, 480>}, {pipeline_mode = #tpu.pipeline_mode<synchronous>, transform_indices = @transform_2, window_bounds = array<i64: 1, 120>}, {pipeline_mode = #tpu.pipeline_mode<synchronous>, transform_indices = @transform_3, window_bounds = array<i64: 600, 160>}, {pipeline_mode = #tpu.pipeline_mode<synchronous>, transform_indices = @transform_4, window_bounds = array<i64: 1, 80>}, {pipeline_mode = #tpu.pipeline_mode<synchronous>, transform_indices = @transform_5, window_bounds = array<i64: 320, 50>}, {pipeline_mode = #tpu.pipeline_mode<synchronous>, transform_indices = @transform_6, window_bounds = array<i64: 1, 50>}, {pipeline_mode = #tpu.pipeline_mode<synchronous>, transform_indices = @transform_7, window_bounds = array<i64: 50, 10>}, {pipeline_mode = #tpu.pipeline_mode<synchronous>, transform_indices = @transform_8, window_bounds = array<i64: 1, 10>}, {transform_indices = @transform_9, window_bounds = array<i64: 1, 1, 10>}]} {
    %c0 = arith.constant 0 : index
    %c0_0 = arith.constant 0 : index
    %c0_1 = arith.constant 0 : index
    %c0_2 = arith.constant 0 : index
    %0 = vector.load %arg1[%c0, %c0_0, %c0_1, %c0_2] : memref<1x1x14x56xf32, #tpu.memory_space<vmem>>, vector<1x1x14x56xf32>
    %1 = vector.shape_cast %0 : vector<1x1x14x56xf32> to vector<1x14x56xf32>
    %2 = vector.extract_strided_slice %1 {offsets = [0, 0, 0], sizes = [1, 12, 56], strides = [1, 1, 1]} : vector<1x14x56xf32> to vector<1x12x56xf32>
    %3 = vector.extract_strided_slice %1 {offsets = [0, 1, 0], sizes = [1, 12, 56], strides = [1, 1, 1]} : vector<1x14x56xf32> to vector<1x12x56xf32>
    %4 = vector.extract_strided_slice %1 {offsets = [0, 2, 0], sizes = [1, 12, 56], strides = [1, 1, 1]} : vector<1x14x56xf32> to vector<1x12x56xf32>
    %5 = tpu.concatenate %2, %3, %4 in 2 : vector<1x12x56xf32>, vector<1x12x56xf32>, vector<1x12x56xf32> -> vector<1x12x168xf32>
    %6 = vector.shape_cast %5 : vector<1x12x168xf32> to vector<12x168xf32>
    %c0_3 = arith.constant 0 : index
    %c0_4 = arith.constant 0 : index
    %7 = vector.load %arg2[%c0_3, %c0_4] : memref<168x480xf32, #tpu.memory_space<vmem>>, vector<168x480xf32>
    %cst = arith.constant dense<0.000000e+00> : vector<12x480xf32>
    %8 = tpu.matmul %6, %7, %cst {dimension_numbers = #tpu.dot_dimension_numbers<[1], [0], [0], [1], [0, 0, 1, 1], [], []>} : vector<12x168xf32>, vector<168x480xf32>, vector<12x480xf32> -> vector<12x480xf32>
    %9 = vector.extract_strided_slice %8 {offsets = [0, 0], sizes = [12, 120], strides = [1, 1]} : vector<12x480xf32> to vector<12x120xf32>
    %10 = vector.extract_strided_slice %8 {offsets = [0, 120], sizes = [12, 120], strides = [1, 1]} : vector<12x480xf32> to vector<12x120xf32>
    %11 = arith.maximumf %9, %10 : vector<12x120xf32>
    %12 = vector.extract_strided_slice %8 {offsets = [0, 240], sizes = [12, 120], strides = [1, 1]} : vector<12x480xf32> to vector<12x120xf32>
    %13 = vector.extract_strided_slice %8 {offsets = [0, 360], sizes = [12, 120], strides = [1, 1]} : vector<12x480xf32> to vector<12x120xf32>
    %14 = arith.maximumf %12, %13 : vector<12x120xf32>
    %15 = arith.maximumf %11, %14 : vector<12x120xf32>
    %c0_5 = arith.constant 0 : index
    %c0_6 = arith.constant 0 : index
    %16 = vector.load %arg3[%c0_5, %c0_6] : memref<1x120xf32, #tpu.memory_space<vmem>>, vector<1x120xf32>
    %17 = vector.broadcast %16 : vector<1x120xf32> to vector<12x120xf32>
    %18 = arith.addf %15, %17 : vector<12x120xf32>
    %cst_7 = arith.constant 0.000000e+00 : f32
    %19 = vector.broadcast %cst_7 : f32 to vector<12x120xf32>
    %20 = arith.maximumf %18, %19 : vector<12x120xf32>
    %21 = vector.shape_cast %20 : vector<12x120xf32> to vector<1x12x120xf32>
    %22 = vector.extract_strided_slice %21 {offsets = [0, 0, 0], sizes = [1, 8, 120], strides = [1, 1, 1]} : vector<1x12x120xf32> to vector<1x8x120xf32>
    %23 = vector.extract_strided_slice %21 {offsets = [0, 1, 0], sizes = [1, 8, 120], strides = [1, 1, 1]} : vector<1x12x120xf32> to vector<1x8x120xf32>
    %24 = vector.extract_strided_slice %21 {offsets = [0, 2, 0], sizes = [1, 8, 120], strides = [1, 1, 1]} : vector<1x12x120xf32> to vector<1x8x120xf32>
    %25 = vector.extract_strided_slice %21 {offsets = [0, 3, 0], sizes = [1, 8, 120], strides = [1, 1, 1]} : vector<1x12x120xf32> to vector<1x8x120xf32>
    %26 = vector.extract_strided_slice %21 {offsets = [0, 4, 0], sizes = [1, 8, 120], strides = [1, 1, 1]} : vector<1x12x120xf32> to vector<1x8x120xf32>
    %27 = tpu.concatenate %22, %23, %24, %25, %26 in 2 : vector<1x8x120xf32>, vector<1x8x120xf32>, vector<1x8x120xf32>, vector<1x8x120xf32>, vector<1x8x120xf32> -> vector<1x8x600xf32>
    %28 = vector.shape_cast %27 : vector<1x8x600xf32> to vector<8x600xf32>
    %c0_8 = arith.constant 0 : index
    %c0_9 = arith.constant 0 : index
    %29 = vector.load %arg4[%c0_8, %c0_9] : memref<600x160xf32, #tpu.memory_space<vmem>>, vector<600x160xf32>
    %cst_10 = arith.constant dense<0.000000e+00> : vector<8x160xf32>
    %30 = tpu.matmul %28, %29, %cst_10 {dimension_numbers = #tpu.dot_dimension_numbers<[1], [0], [0], [1], [0, 0, 1, 1], [], []>} : vector<8x600xf32>, vector<600x160xf32>, vector<8x160xf32> -> vector<8x160xf32>
    %31 = vector.extract_strided_slice %30 {offsets = [0, 0], sizes = [8, 80], strides = [1, 1]} : vector<8x160xf32> to vector<8x80xf32>
    %32 = vector.extract_strided_slice %30 {offsets = [0, 80], sizes = [8, 80], strides = [1, 1]} : vector<8x160xf32> to vector<8x80xf32>
    %33 = arith.maximumf %31, %32 : vector<8x80xf32>
    %c0_11 = arith.constant 0 : index
    %c0_12 = arith.constant 0 : index
    %34 = vector.load %arg5[%c0_11, %c0_12] : memref<1x80xf32, #tpu.memory_space<vmem>>, vector<1x80xf32>
    %35 = vector.broadcast %34 : vector<1x80xf32> to vector<8x80xf32>
    %36 = arith.addf %33, %35 : vector<8x80xf32>
    %cst_13 = arith.constant 0.000000e+00 : f32
    %37 = vector.broadcast %cst_13 : f32 to vector<8x80xf32>
    %38 = arith.maximumf %36, %37 : vector<8x80xf32>
    %39 = vector.shape_cast %38 : vector<8x80xf32> to vector<1x8x80xf32>
    %40 = vector.extract_strided_slice %39 {offsets = [0, 0, 0], sizes = [1, 1, 80], strides = [1, 1, 1]} : vector<1x8x80xf32> to vector<1x1x80xf32>
    %41 = vector.shape_cast %40 : vector<1x1x80xf32> to vector<1x80xf32>
    %42 = vector.extract_strided_slice %39 {offsets = [0, 1, 0], sizes = [1, 1, 80], strides = [1, 1, 1]} : vector<1x8x80xf32> to vector<1x1x80xf32>
    %43 = vector.shape_cast %42 : vector<1x1x80xf32> to vector<1x80xf32>
    %44 = arith.maximumf %41, %43 : vector<1x80xf32>
    %45 = vector.extract_strided_slice %39 {offsets = [0, 2, 0], sizes = [1, 1, 80], strides = [1, 1, 1]} : vector<1x8x80xf32> to vector<1x1x80xf32>
    %46 = vector.shape_cast %45 : vector<1x1x80xf32> to vector<1x80xf32>
    %47 = vector.extract_strided_slice %39 {offsets = [0, 3, 0], sizes = [1, 1, 80], strides = [1, 1, 1]} : vector<1x8x80xf32> to vector<1x1x80xf32>
    %48 = vector.shape_cast %47 : vector<1x1x80xf32> to vector<1x80xf32>
    %49 = arith.maximumf %46, %48 : vector<1x80xf32>
    %50 = vector.extract_strided_slice %39 {offsets = [0, 4, 0], sizes = [1, 1, 80], strides = [1, 1, 1]} : vector<1x8x80xf32> to vector<1x1x80xf32>
    %51 = vector.shape_cast %50 : vector<1x1x80xf32> to vector<1x80xf32>
    %52 = vector.extract_strided_slice %39 {offsets = [0, 5, 0], sizes = [1, 1, 80], strides = [1, 1, 1]} : vector<1x8x80xf32> to vector<1x1x80xf32>
    %53 = vector.shape_cast %52 : vector<1x1x80xf32> to vector<1x80xf32>
    %54 = arith.maximumf %51, %53 : vector<1x80xf32>
    %55 = vector.extract_strided_slice %39 {offsets = [0, 6, 0], sizes = [1, 1, 80], strides = [1, 1, 1]} : vector<1x8x80xf32> to vector<1x1x80xf32>
    %56 = vector.shape_cast %55 : vector<1x1x80xf32> to vector<1x80xf32>
    %57 = vector.extract_strided_slice %39 {offsets = [0, 7, 0], sizes = [1, 1, 80], strides = [1, 1, 1]} : vector<1x8x80xf32> to vector<1x1x80xf32>
    %58 = vector.shape_cast %57 : vector<1x1x80xf32> to vector<1x80xf32>
    %59 = arith.maximumf %56, %58 : vector<1x80xf32>
    %60 = tpu.concatenate %44, %49, %54, %59 in 1 : vector<1x80xf32>, vector<1x80xf32>, vector<1x80xf32>, vector<1x80xf32> -> vector<1x320xf32>
    %c0_14 = arith.constant 0 : index
    %c0_15 = arith.constant 0 : index
    %61 = vector.load %arg6[%c0_14, %c0_15] : memref<320x50xf32, #tpu.memory_space<vmem>>, vector<320x50xf32>
    %cst_16 = arith.constant dense<0.000000e+00> : vector<1x50xf32>
    %62 = tpu.matmul %60, %61, %cst_16 {dimension_numbers = #tpu.dot_dimension_numbers<[1], [0], [0], [1], [0, 0, 1, 1], [], []>} : vector<1x320xf32>, vector<320x50xf32>, vector<1x50xf32> -> vector<1x50xf32>
    %c0_17 = arith.constant 0 : index
    %c0_18 = arith.constant 0 : index
    %63 = vector.load %arg7[%c0_17, %c0_18] : memref<1x50xf32, #tpu.memory_space<vmem>>, vector<1x50xf32>
    %64 = arith.addf %62, %63 : vector<1x50xf32>
    %cst_19 = arith.constant 0.000000e+00 : f32
    %65 = vector.broadcast %cst_19 : f32 to vector<1x50xf32>
    %66 = arith.maximumf %64, %65 : vector<1x50xf32>
    %c0_20 = arith.constant 0 : index
    %c0_21 = arith.constant 0 : index
    %67 = vector.load %arg8[%c0_20, %c0_21] : memref<50x10xf32, #tpu.memory_space<vmem>>, vector<50x10xf32>
    %cst_22 = arith.constant dense<0.000000e+00> : vector<1x10xf32>
    %68 = tpu.matmul %66, %67, %cst_22 {dimension_numbers = #tpu.dot_dimension_numbers<[1], [0], [0], [1], [0, 0, 1, 1], [], []>} : vector<1x50xf32>, vector<50x10xf32>, vector<1x10xf32> -> vector<1x10xf32>
    %c0_23 = arith.constant 0 : index
    %c0_24 = arith.constant 0 : index
    %69 = vector.load %arg9[%c0_23, %c0_24] : memref<1x10xf32, #tpu.memory_space<vmem>>, vector<1x10xf32>
    %70 = arith.addf %68, %69 : vector<1x10xf32>
    %cst_25 = arith.constant dense<0xFF800000> : vector<1xf32>
    %71 = vector.multi_reduction <maximumf>, %70, %cst_25 [1] : vector<1x10xf32> to vector<1xf32>
    %72 = vector.shape_cast %71 : vector<1xf32> to vector<1x1xf32>
    %73 = vector.broadcast %72 : vector<1x1xf32> to vector<1x10xf32>
    %74 = arith.subf %70, %73 : vector<1x10xf32>
    %75 = math.exp %74 : vector<1x10xf32>
    %cst_26 = arith.constant dense<0.000000e+00> : vector<1xf32>
    %76 = vector.multi_reduction <add>, %75, %cst_26 [1] : vector<1x10xf32> to vector<1xf32>
    %77 = vector.shape_cast %76 : vector<1xf32> to vector<1x1xf32>
    %78 = math.log %77 : vector<1x1xf32>
    %79 = vector.broadcast %78 : vector<1x1xf32> to vector<1x10xf32>
    %80 = arith.subf %74, %79 : vector<1x10xf32>
    %c0_27 = arith.constant 0 : index
    %c0_28 = arith.constant 0 : index
    %c0_29 = arith.constant 0 : index
    %81 = vector.load %arg10[%c0_27, %c0_28, %c0_29] : memref<1x1x10xf32, #tpu.memory_space<vmem>>, vector<1x1x10xf32>
    %82 = vector.shape_cast %81 : vector<1x1x10xf32> to vector<1x10xf32>
    %83 = vector.shape_cast %80 : vector<1x10xf32> to vector<1x1x10xf32>
    tpu.vector_store %arg10[%c0_27, %c0_28, %c0_29], %83 {strides = array<i32>} : memref<1x1x10xf32, #tpu.memory_space<vmem>>, vector<1x1x10xf32>,
    return
  }
  func.func @transform_0(%arg0: i32) -> (i32, i32, i32, i32) {
    %c0_i32 = arith.constant 0 : i32
    %c0_i32_0 = arith.constant 0 : i32
    %c0_i32_1 = arith.constant 0 : i32
    %c0_i32_2 = arith.constant 0 : i32
    return %arg0, %c0_i32, %c0_i32_0, %c0_i32_1 : i32, i32, i32, i32
  }
  func.func @transform_1(%arg0: i32) -> (i32, i32) {
    %c0_i32 = arith.constant 0 : i32
    %c0_i32_0 = arith.constant 0 : i32
    %c0_i32_1 = arith.constant 0 : i32
    return %c0_i32, %c0_i32_0 : i32, i32
  }
  func.func @transform_2(%arg0: i32) -> (i32, i32) {
    %c0_i32 = arith.constant 0 : i32
    %c0_i32_0 = arith.constant 0 : i32
    %c0_i32_1 = arith.constant 0 : i32
    return %c0_i32, %c0_i32_0 : i32, i32
  }
  func.func @transform_3(%arg0: i32) -> (i32, i32) {
    %c0_i32 = arith.constant 0 : i32
    %c0_i32_0 = arith.constant 0 : i32
    %c0_i32_1 = arith.constant 0 : i32
    return %c0_i32, %c0_i32_0 : i32, i32
  }
  func.func @transform_4(%arg0: i32) -> (i32, i32) {
    %c0_i32 = arith.constant 0 : i32
    %c0_i32_0 = arith.constant 0 : i32
    %c0_i32_1 = arith.constant 0 : i32
    return %c0_i32, %c0_i32_0 : i32, i32
  }
  func.func @transform_5(%arg0: i32) -> (i32, i32) {
    %c0_i32 = arith.constant 0 : i32
    %c0_i32_0 = arith.constant 0 : i32
    %c0_i32_1 = arith.constant 0 : i32
    return %c0_i32, %c0_i32_0 : i32, i32
  }
  func.func @transform_6(%arg0: i32) -> (i32, i32) {
    %c0_i32 = arith.constant 0 : i32
    %c0_i32_0 = arith.constant 0 : i32
    %c0_i32_1 = arith.constant 0 : i32
    return %c0_i32, %c0_i32_0 : i32, i32
  }
  func.func @transform_7(%arg0: i32) -> (i32, i32) {
    %c0_i32 = arith.constant 0 : i32
    %c0_i32_0 = arith.constant 0 : i32
    %c0_i32_1 = arith.constant 0 : i32
    return %c0_i32, %c0_i32_0 : i32, i32
  }
  func.func @transform_8(%arg0: i32) -> (i32, i32) {
    %c0_i32 = arith.constant 0 : i32
    %c0_i32_0 = arith.constant 0 : i32
    %c0_i32_1 = arith.constant 0 : i32
    return %c0_i32, %c0_i32_0 : i32, i32
  }
  func.func @transform_9(%arg0: i32) -> (i32, i32, i32) {
    %c0_i32 = arith.constant 0 : i32
    %c0_i32_0 = arith.constant 0 : i32
    %c0_i32_1 = arith.constant 0 : i32
    return %arg0, %c0_i32, %c0_i32_0 : i32, i32, i32
  }
}

</mosaic_0001>

<bundles_post_ra>
// kernel: net_forward.1
= control target key start
LH: loop header
LB: loop body
LE: loop exit
PB: predicated region body
PF: predicated region fallthrough
CT: control target
= control target key end

     0   :  { %14 = vsyncpa [#allocation3], 0  ;;  %s2762_s0 = inlined_call_operand.vmem [shape: f32[2,1,14,56], index: 0, kind: input, shape index: {}]   ;;  %s2763_s1 = inlined_call_operand.vmem [shape: f32[168,480], index: 1, kind: input, shape index: {}]   ;;  %s2764_s2 = inlined_call_operand.vmem [shape: f32[1,120], index: 2, kind: input, shape index: {}]   ;;  %s2765_s3 = inlined_call_operand.vmem [shape: f32[600,160], index: 3, kind: input, shape index: {}]   ;;  %s2766_s4 = inlined_call_operand.vmem [shape: f32[1,80], index: 4, kind: input, shape index: {}]   ;;  %s2767_s5 = inlined_call_operand.vmem [shape: f32[320,50], index: 5, kind: input, shape index: {}]   ;;  %s2768_s6 = inlined_call_operand.vmem [shape: f32[1,50], index: 6, kind: input, shape index: {}]   ;;  %s2769_s7 = inlined_call_operand.vmem [shape: f32[50,10], index: 7, kind: input, shape index: {}]   ;;  %s2770_s8 = inlined_call_operand.vmem [shape: f32[1,10], index: 8, kind: input, shape index: {}]   ;;  %s2771_s9 = inlined_call_operand.hbm [shape: f32[2,1,10], index: 9, kind: output, shape index: {}]  }
   0x1   :  { %16 = vsyncpa [#allocation3 + $0x1], 0  ;;  %s1757_s30 = smov 0   ;;  %s1759_s10 = smov 0  }
   0x2   :  { %s1761_s11 = smov 0   ;;  %s1763_s12 = smov 0  }
   0x3 LB: > { %s1778_s13 = sadd.s32 4294967295, %s1692_s12   ;;  %s1469_s14 = sadd.s32 4294967294, %s1692_s12   ;;  %s1692_s12 = sphi %s1763_s12, %s2777_s12   ;;  %s1688_s11 = sphi %s1761_s11, %s2776_s11   ;;  %s1684_s10 = sphi %s1759_s10, %s2775_s10   ;;  %s1680_s30 = sphi %s1757_s30, %s2774_s30  }
   0x4   : > { %s1782_s15 = sadd.s32 1, %s1692_s12   ;;  %s223_s16 = sadd.s32 1, %s1688_s11 }
   0x5   : > { %s220_s17 = ssub.s32 %s1692_s12, %s1782_s15  ;;  %p233_p0 = scmp.ne.s32.totalorder %s1688_s11, %s1684_s10 }
   0x6   : > { %p221_p1 = scmp.eq.s32.totalorder %s220_s17, 0  ;;  %p234_p2 = scmp.eq.s32.totalorder %s1778_s13, 1 }
   0x7   : > { %p239_p3 = scmp.ne.s32.totalorder %s1684_s10, %s1680_s30  ;;  %p240_p4 = scmp.eq.s32.totalorder %s1469_s14, 1 }
   0x8   : > { %s1793_s18 = scalar_select %p221_p1, %s1688_s11, %s223_s16  }
   0x9   : > { %p1795_p5 = por %p234_p2, %p233_p0  ;;  %p1799_p6 = por %p240_p4, %p239_p3 }
   0xa   : > { %p1472_p7 = scmp.ge.s32.totalorder %s1692_s12, 1  ;;  %p290_p8 = scmp.lt.s32.totalorder %s1692_s12, 3 }
   0xc   : > { %p291_p9 = pnand %p1472_p7, %p290_p8 }
   0xd   : > { %p325_p10 = scmp.lt.s32.totalorder (!%p291_p9), %s1778_s13, 1  ;;  %s1695_s17 = smov (!%p291_p9), 112  }
   0xe   : > { %294 = sbr.rel (%p291_p9) target bundleno = 1901 (0x76d), region = 56  ;;  %s1696_s27 = smov (!%p291_p9), 8  }
   0xf   : > { %s1697_s28 = smov (!%p291_p9), 16   ;;  %s1699_s26 = smov (!%p291_p9), 96  }
  0x10   : > { %s1704_s22 = smov (!%p291_p9), 32   ;;  %s1705_s23 = smov (!%p291_p9), 80  }
  0x11   : > { %s1485_s29 = sshll.u32 (!%p291_p9), %s1778_s13, 4 }
  0x12   : > { %s1412_s24 = scalar_lea.hbm (!%p291_p9), %s2771_s9, %s1485_s29 }
  0x13   : > { %v421_v0 = vld [vmem:[%s2763_s1 + $0x1e8] sm:$0xff]  ;;  %v423_v1 = vld [vmem:[%s2763_s1 + $0x1f8] sm:$0xff]  ;;  %v420_v2 = vld [vmem:[%s2763_s1 + $0x1e0] sm:$0xff]  ;;  %s326_s16 = scalar_select %p325_p10, %s1778_s13, 1  ;;  %vm334_vm0 = vcmask 1046528   ;;  %vm344_vm1 = vcmask 1045504  }
  0x14   : > { %449 = vmatprep.subr.mxu0 %v421_v0  ;;  %526 = vmatprep.subr.mxu1 %v423_v1  ;;  %v422_v3 = vld [vmem:[%s2763_s1 + $0x1f0] sm:$0xff]  ;;  %v417_v4 = vld [vmem:[%s2763_s1 + $0x1c8] sm:$0xff]  ;;  %v419_v5 = vld [vmem:[%s2763_s1 + $0x1d8] sm:$0xff]  ;;  %vm354_vm2 = vcmask 457728   ;;  %vm444_vm3 = vcmask 326656   ;;  %vm357_vm4 = vcmask 916480  }
  0x15   : > { %450 = vmatpush1.msra.mxu0 %v420_v2  ;;  %527 = vmatpush1.msra.mxu1 %v422_v3  ;;  %v416_v6 = vld [vmem:[%s2763_s1 + $0x1c0] sm:$0xff]  ;;  %v418_v7 = vld [vmem:[%s2763_s1 + $0x1d0] sm:$0xff]  ;;  %v413_v8 = vld [vmem:[%s2763_s1 + $0x1a8] sm:$0xff]  ;;  %s1488_s21 = sshll.u32 %s326_s16, 4  ;;  %s1694_s16 = smov 56   ;;  %vm615_vm5 = vcmask 64512  }
  0x16   : > { %451 = vmatprep.subr.mxu0 %v417_v4  ;;  %528 = vmatprep.subr.mxu1 %v419_v5  ;;  %v415_v9 = vld [vmem:[%s2763_s1 + $0x1b8] sm:$0xff]  ;;  %v412_v10 = vld [vmem:[%s2763_s1 + $0x1a0] sm:$0xff]  ;;  %v414_v11 = vld [vmem:[%s2763_s1 + $0x1b0] sm:$0xff]  ;;  %s329_s14 = scalar_lea.vmem %s2762_s0, %s1488_s21  ;;  %vm656_vm6 = vcmask 130048   ;;  %s1698_s21 = smov 120   ;;  %vm695_vm7 = vcmask 1043456  }
  0x17   : > { %452 = vmatpush1.msra.mxu0 %v416_v6  ;;  %529 = vmatpush1.msra.mxu1 %v418_v7  ;;  %v409_v12 = vld [vmem:[%s2763_s1 + $0x188] sm:$0xff]  ;;  %v411_v13 = vld [vmem:[%s2763_s1 + $0x198] sm:$0xff]  ;;  %v408_v14 = vld [vmem:[%s2763_s1 + $0x180] sm:$0xff]  ;;  %vm688_vm8 = vcmask 1044480   ;;  %vm702_vm9 = vcmask 982016   ;;  %vm705_vm10 = vcmask 850944  }
  0x18   : > { %453 = vmatprep.subr.mxu0 %v413_v8  ;;  %530 = vmatprep.subr.mxu1 %v415_v9  ;;  %v410_v15 = vld [vmem:[%s2763_s1 + $0x190] sm:$0xff]  ;;  %v1858_v16 = vld [vmem:[%s329_s14] sm:$0xff]  ;;  %v1860_v17 = vld [vmem:[%s329_s14 + $0x8] sm:$0x3f]  ;;  %vm707_vm11 = vcmask 785408   ;;  %vm859_vm12 = vcmask 719872  }
  0x19   : > { %454 = vmatpush1.msra.mxu0 %v412_v10  ;;  %531 = vmatpush1.msra.mxu1 %v414_v11  ;;  %v405_v18 = vld [vmem:[%s2763_s1 + $0x168] sm:$0xff]  ;;  %v335_v19 = vrot.slane %v1858_v16, 1  ;;  %v336_v20 = vrot.slane %v1860_v17, 1  ;;  %v345_v21 = vrot.slane %v1858_v16, 2  ;;  %v346_v22 = vrot.slane %v1860_v17, 2  ;;  %v407_v23 = vld [vmem:[%s2763_s1 + $0x178] sm:$0xff] }
  0x1a   : > { %455 = vmatprep.subr.mxu0 %v409_v12  ;;  %532 = vmatprep.subr.mxu1 %v411_v13  ;;  %v404_v24 = vld [vmem:[%s2763_s1 + $0x160] sm:$0xff]  ;;  %v406_v25 = vld [vmem:[%s2763_s1 + $0x170] sm:$0xff]  ;;  %v401_v27 = vld [vmem:[%s2763_s1 + $0x148] sm:$0xff]  ;;  %vm1081_vm13 = vcmask 392192   ;;  %vm1703_vm14 = vmmov 0   ;;  %vm1113_vm15 = vcmask 261120  }
  0x1b   : > { %456 = vmatpush1.msra.mxu0 %v408_v14  ;;  %533 = vmatpush1.msra.mxu1 %v410_v15  ;;  %v337_v26 = vsel %vm334_vm0, %v335_v19, %v336_v20  ;;  %v403_v28 = vld [vmem:[%s2763_s1 + $0x158] sm:$0xff]  ;;  %v400_v29 = vld [vmem:[%s2763_s1 + $0x140] sm:$0xff]  ;;  %v347_v30 = vsel %vm344_vm1, %v345_v21, %v346_v22  ;;  %v402_v31 = vld [vmem:[%s2763_s1 + $0x150] sm:$0xff] }
  0x1c   : > { %340 = vrot.lane.b32.xlu1 %v336_v20, %s1694_s16  ;;  %457 = vmatprep.subr.mxu0 %v405_v18  ;;  %v397_v32 = vld [vmem:[%s2763_s1 + $0x128] sm:$0xff]  ;;  %v399_v33 = vld [vmem:[%s2763_s1 + $0x138] sm:$0xff]  ;;  %v396_v34 = vld [vmem:[%s2763_s1 + $0x120] sm:$0xff] }
  0x1d   : > { %338 = vrot.lane.b32.xlu0 %v337_v26, %s1694_s16  ;;  %534 = vmatprep.subr.mxu1 %v407_v23  ;;  %v398_v35 = vld [vmem:[%s2763_s1 + $0x130] sm:$0xff]  ;;  %v393_v36 = vld [vmem:[%s2763_s1 + $0x108] sm:$0xff]  ;;  %v395_v37 = vld [vmem:[%s2763_s1 + $0x118] sm:$0xff] }
  0x1e   : > { %458 = vmatpush1.msra.mxu0 %v404_v24  ;;  %535 = vmatpush1.msra.mxu1 %v406_v25  ;;  %v392_v38 = vld [vmem:[%s2763_s1 + $0x100] sm:$0xff]  ;;  %v394_v39 = vld [vmem:[%s2763_s1 + $0x110] sm:$0xff]  ;;  %v389_v40 = vld [vmem:[%s2763_s1 + $0xe8] sm:$0xff] }
  0x1f   : > { %459 = vmatprep.subr.mxu0 %v401_v27  ;;  %536 = vmatprep.subr.mxu1 %v403_v28  ;;  %v391_v41 = vld [vmem:[%s2763_s1 + $0xf8] sm:$0xff]  ;;  %v388_v42 = vld [vmem:[%s2763_s1 + $0xe0] sm:$0xff]  ;;  %v390_v43 = vld [vmem:[%s2763_s1 + $0xf0] sm:$0xff] }
  0x20   : > { %350 = vrot.lane.b32.xlu1 %v346_v22, %s1695_s17  ;;  %460 = vmatpush1.msra.mxu0 %v400_v29  ;;  %v385_v44 = vld [vmem:[%s2763_s1 + $0xc8] sm:$0xff]  ;;  %v387_v45 = vld [vmem:[%s2763_s1 + $0xd8] sm:$0xff]  ;;  %v384_v46 = vld [vmem:[%s2763_s1 + $0xc0] sm:$0xff] }
  0x21   : > { %348 = vrot.lane.b32.xlu0 %v347_v30, %s1695_s17  ;;  %537 = vmatpush1.msra.mxu1 %v402_v31  ;;  %v386_v47 = vld [vmem:[%s2763_s1 + $0xd0] sm:$0xff]  ;;  %v381_v48 = vld [vmem:[%s2763_s1 + $0xa8] sm:$0xff]  ;;  %v383_v49 = vld [vmem:[%s2763_s1 + $0xb8] sm:$0xff] }
  0x22   : > { %461 = vmatprep.subr.mxu0 %v397_v32  ;;  %538 = vmatprep.subr.mxu1 %v399_v33  ;;  %v380_v50 = vld [vmem:[%s2763_s1 + $0xa0] sm:$0xff]  ;;  %v382_v51 = vld [vmem:[%s2763_s1 + $0xb0] sm:$0xff]  ;;  %v377_v52 = vld [vmem:[%s2763_s1 + $0x88] sm:$0xff] }
  0x23   : > { %462 = vmatpush1.msra.mxu0 %v396_v34  ;;  %539 = vmatpush1.msra.mxu1 %v398_v35  ;;  %v379_v53 = vld [vmem:[%s2763_s1 + $0x98] sm:$0xff]  ;;  %v376_v54 = vld [vmem:[%s2763_s1 + $0x80] sm:$0xff]  ;;  %v378_v55 = vld [vmem:[%s2763_s1 + $0x90] sm:$0xff] }
  0x24   : > { %463 = vmatprep.subr.mxu0 %v393_v36  ;;  %540 = vmatprep.subr.mxu1 %v395_v37  ;;  %v373_v56 = vld [vmem:[%s2763_s1 + $0x68] sm:$0xff]  ;;  %v375_v57 = vld [vmem:[%s2763_s1 + $0x78] sm:$0xff]  ;;  %v372_v58 = vld [vmem:[%s2763_s1 + $0x60] sm:$0xff] }
  0x25   : > { %464 = vmatpush1.msra.mxu0 %v392_v38  ;;  %541 = vmatpush1.msra.mxu1 %v394_v39  ;;  %v374_v59 = vld [vmem:[%s2763_s1 + $0x70] sm:$0xff]  ;;  %v369_v60 = vld [vmem:[%s2763_s1 + $0x48] sm:$0xff]  ;;  %v371_v61 = vld [vmem:[%s2763_s1 + $0x58] sm:$0xff] }
  0x26   : > { %465 = vmatprep.subr.mxu0 %v389_v40  ;;  %542 = vmatprep.subr.mxu1 %v391_v41  ;;  %v368_v62 = vld [vmem:[%s2763_s1 + $0x40] sm:$0xff]  ;;  %v370_v63 = vld [vmem:[%s2763_s1 + $0x50] sm:$0xff]  ;;  %v365_v0 = vld [vmem:[%s2763_s1 + $0x28] sm:$0xff] }
  0x27   : > { %466 = vmatpush1.msra.mxu0 %v388_v42  ;;  %543 = vmatpush1.msra.mxu1 %v390_v43  ;;  %v367_v1 = vld [vmem:[%s2763_s1 + $0x38] sm:$0xff]  ;;  %v364_v2 = vld [vmem:[%s2763_s1 + $0x20] sm:$0xff]  ;;  %v366_v3 = vld [vmem:[%s2763_s1 + $0x30] sm:$0xff] }
  0x28   : > { %467 = vmatprep.subr.mxu0 %v385_v44  ;;  %544 = vmatprep.subr.mxu1 %v387_v45  ;;  %v361_v4 = vld [vmem:[%s2763_s1 + $0x8] sm:$0xff]  ;;  %v363_v5 = vld [vmem:[%s2763_s1 + $0x18] sm:$0xff]  ;;  %v360_v6 = vld [vmem:[%s2763_s1] sm:$0xff] }
  0x29   : > { %468 = vmatpush1.msra.mxu0 %v384_v46  ;;  %545 = vmatpush1.msra.mxu1 %v386_v47  ;;  %v362_v7 = vld [vmem:[%s2763_s1 + $0x10] sm:$0xff]  ;;  %v441_v8 = vld [vmem:[%s2763_s1 + $0x288] sm:$0xff]  ;;  %v443_v9 = vld [vmem:[%s2763_s1 + $0x298] sm:$0xff] }
  0x2a   : > { %469 = vmatprep.subr.mxu0 %v381_v48  ;;  %546 = vmatprep.subr.mxu1 %v383_v49  ;;  %v440_v10 = vld [vmem:[%s2763_s1 + $0x280] sm:$0xff]  ;;  %v442_v11 = vld [vmem:[%s2763_s1 + $0x290] sm:$0xff]  ;;  %v437_v12 = vld [vmem:[%s2763_s1 + $0x268] sm:$0xff] }
  0x2b   : > { %470 = vmatpush1.msra.mxu0 %v380_v50  ;;  %547 = vmatpush1.msra.mxu1 %v382_v51  ;;  %v439_v13 = vld [vmem:[%s2763_s1 + $0x278] sm:$0xff]  ;;  %v436_v14 = vld [vmem:[%s2763_s1 + $0x260] sm:$0xff]  ;;  %v438_v15 = vld [vmem:[%s2763_s1 + $0x270] sm:$0xff] }
  0x2c   : > { %471 = vmatprep.subr.mxu0 %v377_v52  ;;  %548 = vmatprep.subr.mxu1 %v379_v53  ;;  %v433_v18 = vld [vmem:[%s2763_s1 + $0x248] sm:$0xff]  ;;  %v435_v19 = vld [vmem:[%s2763_s1 + $0x258] sm:$0xff]  ;;  %v432_v20 = vld [vmem:[%s2763_s1 + $0x240] sm:$0xff] }
  0x2d   : > { %472 = vmatpush1.msra.mxu0 %v376_v54  ;;  %549 = vmatpush1.msra.mxu1 %v378_v55  ;;  %v434_v21 = vld [vmem:[%s2763_s1 + $0x250] sm:$0xff]  ;;  %v429_v22 = vld [vmem:[%s2763_s1 + $0x228] sm:$0xff]  ;;  %v431_v23 = vld [vmem:[%s2763_s1 + $0x238] sm:$0xff] }
  0x2e   : > { %473 = vmatprep.subr.mxu0 %v373_v56  ;;  %550 = vmatprep.subr.mxu1 %v375_v57  ;;  %v428_v24 = vld [vmem:[%s2763_s1 + $0x220] sm:$0xff]  ;;  %v430_v25 = vld [vmem:[%s2763_s1 + $0x230] sm:$0xff]  ;;  %v425_v26 = vld [vmem:[%s2763_s1 + $0x208] sm:$0xff] }
  0x2f   : > { %474 = vmatpush1.msra.mxu0 %v372_v58  ;;  %551 = vmatpush1.msra.mxu1 %v374_v59  ;;  %v427_v27 = vld [vmem:[%s2763_s1 + $0x218] sm:$0xff]  ;;  %v424_v28 = vld [vmem:[%s2763_s1 + $0x200] sm:$0xff]  ;;  %v426_v29 = vld [vmem:[%s2763_s1 + $0x210] sm:$0xff] }
  0x30   : > { %475 = vmatprep.subr.mxu0 %v369_v60  ;;  %552 = vmatprep.subr.mxu1 %v371_v61  ;;  %v740_v54 = vld [vmem:[%s2765_s3 + $0xf8] sm:$0xff]  ;;  %v739_v55 = vld [vmem:[%s2765_s3 + $0xf0] sm:$0xff]  ;;  %v738_v56 = vld [vmem:[%s2765_s3 + $0xe8] sm:$0xff] }
  0x31   : > { %476 = vmatpush1.msra.mxu0 %v368_v62  ;;  %553 = vmatpush1.msra.mxu1 %v370_v63  ;;  %v737_v57 = vld [vmem:[%s2765_s3 + $0xe0] sm:$0xff]  ;;  %v736_v58 = vld [vmem:[%s2765_s3 + $0xd8] sm:$0xff]  ;;  %v803_v60 = vld [vmem:[%s2765_s3 + $0x2f0] sm:$0xff] }
  0x32   : > { %477 = vmatprep.subr.mxu0 %v365_v0  ;;  %554 = vmatprep.subr.mxu1 %v367_v1  ;;  %v804_v59 = vld [vmem:[%s2765_s3 + $0x2f8] sm:$0xff]  ;;  %v735_v61 = vld [vmem:[%s2765_s3 + $0xd0] sm:$0xff]  ;;  %v802_v62 = vld [vmem:[%s2765_s3 + $0x2e8] sm:$0xff] }
  0x33   : > { %478 = vmatpush1.msra.mxu0 %v364_v2  ;;  %555 = vmatpush1.msra.mxu1 %v366_v3  ;;  %v734_v63 = vld [vmem:[%s2765_s3 + $0xc8] sm:$0xff]  ;;  %v801_v0 = vld [vmem:[%s2765_s3 + $0x2e0] sm:$0xff]  ;;  %v800_v1 = vld [vmem:[%s2765_s3 + $0x2d8] sm:$0xff] }
  0x34   : > { %479 = vmatprep.subr.mxu0 %v361_v4  ;;  %556 = vmatprep.subr.mxu1 %v363_v5  ;;  %v733_v2 = vld [vmem:[%s2765_s3 + $0xc0] sm:$0xff]  ;;  %v799_v3 = vld [vmem:[%s2765_s3 + $0x2d0] sm:$0xff]  ;;  %v732_v4 = vld [vmem:[%s2765_s3 + $0xb8] sm:$0xff] }
  0x35   : > { %480 = vmatpush1.msra.mxu0 %v360_v6  ;;  %557 = vmatpush1.msra.mxu1 %v362_v7  ;;  %v798_v5 = vld [vmem:[%s2765_s3 + $0x2c8] sm:$0xff]  ;;  %v731_v6 = vld [vmem:[%s2765_s3 + $0xb0] sm:$0xff]  ;;  %v797_v7 = vld [vmem:[%s2765_s3 + $0x2c0] sm:$0xff] }
  0x36   : > { %503 = vmatprep.subr.mxu0 %v441_v8  ;;  %580 = vmatprep.subr.mxu1 %v443_v9  ;;  %v730_v8 = vld [vmem:[%s2765_s3 + $0xa8] sm:$0xff]  ;;  %v796_v9 = vld [vmem:[%s2765_s3 + $0x2b8] sm:$0xff] }
  0x37   : > { %504 = vmatpush2.msra.mxu0 %v440_v10  ;;  %581 = vmatpush2.msra.mxu1 %v442_v11  ;;  %v729_v10 = vld [vmem:[%s2765_s3 + $0xa0] sm:$0xff]  ;;  %v795_v11 = vld [vmem:[%s2765_s3 + $0x2b0] sm:$0xff] }
  0x38   : > { %505 = vmatprep.subr.mxu0 %v437_v12  ;;  %582 = vmatprep.subr.mxu1 %v439_v13  ;;  %v728_v12 = vld [vmem:[%s2765_s3 + $0x98] sm:$0xff]  ;;  %v794_v13 = vld [vmem:[%s2765_s3 + $0x2a8] sm:$0xff] }
  0x39   : > { %506 = vmatpush2.msra.mxu0 %v436_v14  ;;  %583 = vmatpush2.msra.mxu1 %v438_v15  ;;  %v727_v14 = vld [vmem:[%s2765_s3 + $0x90] sm:$0xff]  ;;  %v793_v15 = vld [vmem:[%s2765_s3 + $0x2a0] sm:$0xff] }
  0x3a   : > { %507 = vmatprep.subr.mxu0 %v433_v18  ;;  %584 = vmatprep.subr.mxu1 %v435_v19  ;;  %v726_v18 = vld [vmem:[%s2765_s3 + $0x88] sm:$0xff]  ;;  %v792_v19 = vld [vmem:[%s2765_s3 + $0x298] sm:$0xff] }
  0x3b   : > { %508 = vmatpush2.msra.mxu0 %v432_v20  ;;  %585 = vmatpush2.msra.mxu1 %v434_v21  ;;  %v725_v20 = vld [vmem:[%s2765_s3 + $0x80] sm:$0xff]  ;;  %v791_v21 = vld [vmem:[%s2765_s3 + $0x290] sm:$0xff] }
  0x3c   : > { %509 = vmatprep.subr.mxu0 %v429_v22  ;;  %586 = vmatprep.subr.mxu1 %v431_v23  ;;  %v724_v22 = vld [vmem:[%s2765_s3 + $0x78] sm:$0xff]  ;;  %v790_v23 = vld [vmem:[%s2765_s3 + $0x288] sm:$0xff] }
  0x3d   : > { %510 = vmatpush2.msra.mxu0 %v428_v24  ;;  %587 = vmatpush2.msra.mxu1 %v430_v25  ;;  %v723_v24 = vld [vmem:[%s2765_s3 + $0x70] sm:$0xff]  ;;  %v789_v25 = vld [vmem:[%s2765_s3 + $0x280] sm:$0xff] }
  0x3e   : > { %511 = vmatprep.subr.mxu0 %v425_v26  ;;  %588 = vmatprep.subr.mxu1 %v427_v27  ;;  %v722_v26 = vld [vmem:[%s2765_s3 + $0x68] sm:$0xff]  ;;  %v788_v27 = vld [vmem:[%s2765_s3 + $0x278] sm:$0xff] }
  0x3f   : > { %512 = vmatpush2.msra.mxu0 %v424_v28  ;;  %589 = vmatpush2.msra.mxu1 %v426_v29  ;;  %v721_v28 = vld [vmem:[%s2765_s3 + $0x60] sm:$0xff]  ;;  %v787_v29 = vld [vmem:[%s2765_s3 + $0x270] sm:$0xff] }
  0x40   : > { %862 = vmatprep.subr.mxu0 %v740_v54  ;;  %933 = vmatprep.subr.mxu1 %v804_v59  ;;  %v772_v54 = vld [vmem:[%s2765_s3 + $0x1f8] sm:$0xff] }
  0x41   : > { %v836_v59 = vld [vmem:[%s2765_s3 + $0x3f8] sm:$0xff] }
  0x8e   : > { %v341_v31 = vpop.permute.xlu1 %340 }
  0x8f   : > { %v339_v30 = vpop.permute.xlu0 %338  ;;  %v356_v35 = vsel %vm354_vm2, %v1860_v17, %v341_v31  ;;  %v786_v31 = vld [vmem:[%s2765_s3 + $0x268] sm:$0xff] }
  0x90   : > { %v355_v32 = vsel %vm354_vm2, %v1858_v16, %v339_v30  ;;  %v720_v30 = vld [vmem:[%s2765_s3 + $0x58] sm:$0xff]  ;;  %vm1313_vm2 = vcmask 1041408  }
  0x92   : > { %v351_v36 = vpop.permute.xlu1 %350 }
  0x93   : > { %v349_v33 = vpop.permute.xlu0 %348  ;;  %v359_v37 = vsel %vm357_vm4, %v356_v35, %v351_v36  ;;  %v784_v35 = vld [vmem:[%s2765_s3 + $0x258] sm:$0xff] }
  0x94   : > { %1475 = vmatprep.mubr.msk.f32.mxu0 %vm444_vm3, %v349_v33  ;;  %1477 = vmatprep.mubr.msk.f32.mxu1 %vm444_vm3, %v349_v33  ;;  %v358_v34 = vsel %vm357_vm4, %v355_v32, %v349_v33  ;;  %v719_v32 = vld [vmem:[%s2765_s3 + $0x50] sm:$0xff]  ;;  %v785_v33 = vld [vmem:[%s2765_s3 + $0x260] sm:$0xff] }
  0x95   : > { %514 = vmatmul.mubr.f32.vlgmr.msra.gmra.mxu0 %v358_v34  ;;  %591 = vmatmul.mubr.f32.vlgmr.msra.gmra.mxu1 %v358_v34  ;;  %v718_v34 = vld [vmem:[%s2765_s3 + $0x48] sm:$0xff] }
  0x96   : > { %1476 = vmatprep.mubr.msk.f32.mxu0 %vm444_vm3, %v351_v36  ;;  %1478 = vmatprep.mubr.msk.f32.mxu1 %vm444_vm3, %v351_v36  ;;  %v717_v36 = vld [vmem:[%s2765_s3 + $0x40] sm:$0xff]  ;;  %vm1309_vm3 = vcmask 408576  }
  0x97   : > { %863 = vmatpush1.msra.mxu0 %v739_v55  ;;  %934 = vmatpush1.msra.mxu1 %v803_v60  ;;  %v774_v55 = vld [vmem:[%s2765_s3 + $0x208] sm:$0xff]  ;;  %v769_v60 = vld [vmem:[%s2765_s3 + $0x1e0] sm:$0xff] }
  0x98   : > { %864 = vmatprep.subr.mxu0 %v738_v56  ;;  %935 = vmatprep.subr.mxu1 %v802_v62  ;;  %v771_v56 = vld [vmem:[%s2765_s3 + $0x1f0] sm:$0xff]  ;;  %v768_v62 = vld [vmem:[%s2765_s3 + $0x1d8] sm:$0xff] }
  0x99   : > { %520 = vmatmul.mubr.f32.gmra.mxu0 %v359_v37  ;;  %597 = vmatmul.mubr.f32.gmra.mxu1 %v359_v37  ;;  %v783_v37 = vld [vmem:[%s2765_s3 + $0x250] sm:$0xff] }
  0x9a   : > { %865 = vmatpush1.msra.mxu0 %v737_v57  ;;  %936 = vmatpush1.msra.mxu1 %v801_v0  ;;  %v773_v57 = vld [vmem:[%s2765_s3 + $0x200] sm:$0xff]  ;;  %v767_v0 = vld [vmem:[%s2765_s3 + $0x1d0] sm:$0xff] }
  0x9b   : > { %866 = vmatprep.subr.mxu0 %v736_v58  ;;  %937 = vmatprep.subr.mxu1 %v800_v1  ;;  %v770_v58 = vld [vmem:[%s2765_s3 + $0x1e8] sm:$0xff]  ;;  %v833_v1 = vld [vmem:[%s2765_s3 + $0x3e0] sm:$0xff] }
  0x9c   : > { %867 = vmatpush1.msra.mxu0 %v735_v61  ;;  %938 = vmatpush1.msra.mxu1 %v799_v3  ;;  %v835_v61 = vld [vmem:[%s2765_s3 + $0x3f0] sm:$0xff]  ;;  %v832_v3 = vld [vmem:[%s2765_s3 + $0x3d8] sm:$0xff] }
  0x9d   : > { %868 = vmatprep.subr.mxu0 %v734_v63  ;;  %939 = vmatprep.subr.mxu1 %v798_v5  ;;  %v834_v63 = vld [vmem:[%s2765_s3 + $0x3e8] sm:$0xff]  ;;  %v831_v5 = vld [vmem:[%s2765_s3 + $0x3d0] sm:$0xff] }
  0x9e   : > { %869 = vmatpush1.msra.mxu0 %v733_v2  ;;  %940 = vmatpush1.msra.mxu1 %v797_v7  ;;  %v766_v2 = vld [vmem:[%s2765_s3 + $0x1c8] sm:$0xff] }
  0x9f   : > { %870 = vmatprep.subr.mxu0 %v732_v4  ;;  %941 = vmatprep.subr.mxu1 %v796_v9  ;;  %v765_v4 = vld [vmem:[%s2765_s3 + $0x1c0] sm:$0xff]  ;;  %v830_v7 = vld [vmem:[%s2765_s3 + $0x3c8] sm:$0xff] }
  0xa0   : > { %871 = vmatpush1.msra.mxu0 %v731_v6  ;;  %942 = vmatpush1.msra.mxu1 %v795_v11  ;;  %v764_v6 = vld [vmem:[%s2765_s3 + $0x1b8] sm:$0xff]  ;;  %v829_v9 = vld [vmem:[%s2765_s3 + $0x3c0] sm:$0xff] }
  0xa1   : > { %872 = vmatprep.subr.mxu0 %v730_v8  ;;  %943 = vmatprep.subr.mxu1 %v794_v13  ;;  %v763_v8 = vld [vmem:[%s2765_s3 + $0x1b0] sm:$0xff]  ;;  %v828_v11 = vld [vmem:[%s2765_s3 + $0x3b8] sm:$0xff] }
  0xa2   : > { %873 = vmatpush1.msra.mxu0 %v729_v10  ;;  %944 = vmatpush1.msra.mxu1 %v793_v15  ;;  %v762_v10 = vld [vmem:[%s2765_s3 + $0x1a8] sm:$0xff]  ;;  %v827_v13 = vld [vmem:[%s2765_s3 + $0x3b0] sm:$0xff] }
  0xa3   : > { %874 = vmatprep.subr.mxu0 %v728_v12  ;;  %945 = vmatprep.subr.mxu1 %v792_v19  ;;  %v761_v12 = vld [vmem:[%s2765_s3 + $0x1a0] sm:$0xff]  ;;  %v826_v15 = vld [vmem:[%s2765_s3 + $0x3a8] sm:$0xff] }
  0xa4   : > { %875 = vmatpush1.msra.mxu0 %v727_v14  ;;  %946 = vmatpush1.msra.mxu1 %v791_v21  ;;  %v760_v14 = vld [vmem:[%s2765_s3 + $0x198] sm:$0xff]  ;;  %v825_v19 = vld [vmem:[%s2765_s3 + $0x3a0] sm:$0xff] }
  0xa5   : > { %876 = vmatprep.subr.mxu0 %v726_v18  ;;  %947 = vmatprep.subr.mxu1 %v790_v23  ;;  %v759_v18 = vld [vmem:[%s2765_s3 + $0x190] sm:$0xff]  ;;  %v824_v21 = vld [vmem:[%s2765_s3 + $0x398] sm:$0xff] }
  0xa6   : > { %877 = vmatpush1.msra.mxu0 %v725_v20  ;;  %948 = vmatpush1.msra.mxu1 %v789_v25  ;;  %v758_v20 = vld [vmem:[%s2765_s3 + $0x188] sm:$0xff]  ;;  %v823_v23 = vld [vmem:[%s2765_s3 + $0x390] sm:$0xff] }
  0xa7   : > { %878 = vmatprep.subr.mxu0 %v724_v22  ;;  %949 = vmatprep.subr.mxu1 %v788_v27  ;;  %v757_v22 = vld [vmem:[%s2765_s3 + $0x180] sm:$0xff]  ;;  %v822_v25 = vld [vmem:[%s2765_s3 + $0x388] sm:$0xff] }
  0xa8   : > { %879 = vmatpush1.msra.mxu0 %v723_v24  ;;  %950 = vmatpush1.msra.mxu1 %v787_v29  ;;  %v756_v24 = vld [vmem:[%s2765_s3 + $0x178] sm:$0xff]  ;;  %v821_v27 = vld [vmem:[%s2765_s3 + $0x380] sm:$0xff] }
  0xa9   : > { %880 = vmatprep.subr.mxu0 %v722_v26  ;;  %951 = vmatprep.subr.mxu1 %v786_v31  ;;  %v755_v26 = vld [vmem:[%s2765_s3 + $0x170] sm:$0xff]  ;;  %v820_v29 = vld [vmem:[%s2765_s3 + $0x378] sm:$0xff] }
  0xaa   : > { %881 = vmatpush1.msra.mxu0 %v721_v28  ;;  %952 = vmatpush1.msra.mxu1 %v785_v33  ;;  %v754_v28 = vld [vmem:[%s2765_s3 + $0x168] sm:$0xff]  ;;  %v819_v31 = vld [vmem:[%s2765_s3 + $0x370] sm:$0xff] }
  0xab   : > { %882 = vmatprep.subr.mxu0 %v720_v30  ;;  %953 = vmatprep.subr.mxu1 %v784_v35  ;;  %v753_v30 = vld [vmem:[%s2765_s3 + $0x160] sm:$0xff]  ;;  %v818_v33 = vld [vmem:[%s2765_s3 + $0x368] sm:$0xff] }
  0xac   : > { %883 = vmatpush1.msra.mxu0 %v719_v32  ;;  %954 = vmatpush1.msra.mxu1 %v783_v37  ;;  %v752_v32 = vld [vmem:[%s2765_s3 + $0x158] sm:$0xff]  ;;  %v817_v35 = vld [vmem:[%s2765_s3 + $0x360] sm:$0xff] }
  0xad   : > { %884 = vmatprep.subr.mxu0 %v718_v34  ;;  %v751_v34 = vld [vmem:[%s2765_s3 + $0x150] sm:$0xff]  ;;  %v816_v37 = vld [vmem:[%s2765_s3 + $0x358] sm:$0xff] }
  0xae   : > { %885 = vmatpush1.msra.mxu0 %v717_v36  ;;  %v750_v36 = vld [vmem:[%s2765_s3 + $0x148] sm:$0xff] }
 0x155   : > { %v592_v38 = vpop.f32.mrf.mxu1  ;;  %v2078_v16 = vpop.f32.mrf.mxu0 }
 0x156   : > { %626 = vrot.lane.b32.xlu0 %v592_v38, %s1696_s27 }
 0x157   : > { %v594_v39 = vpop.f32.mrf.mxu1  ;;  %v517_v41 = vpop.f32.mrf.mxu0 }
 0x158   : > { %628 = vrot.lane.b32.xlu1 %v594_v39, %s1696_s27  ;;  %v782_v39 = vld [vmem:[%s2765_s3 + $0x248] sm:$0xff] }
 0x159   : > { %v598_v40 = vpop.f32.mrf.mxu1  ;;  %v2081_v42 = vpop.f32.mrf.mxu0  ;;  %955 = vmatprep.subr.mxu1 %v782_v39  ;;  %v815_v39 = vld [vmem:[%s2765_s3 + $0x350] sm:$0xff] }
 0x15a   : > { %630 = vrot.lane.b32.xlu0 %v598_v40, %s1696_s27 }
 0x15b   : > { %v600_v17 = vpop.f32.mrf.mxu1  ;;  %v523_v43 = vpop.f32.mrf.mxu0 }
 0x15c   : > { %632 = vrot.lane.b32.xlu1 %v600_v17, %s1696_s27  ;;  %v714_v17 = vld [vmem:[%s2765_s3 + $0x28] sm:$0xff] }
 0x15e   : > { %607 = vrot.lane.b32.xlu0 %v2078_v16, %s1696_s27 }
 0x160   : > { %609 = vrot.lane.b32.xlu1 %v517_v41, %s1696_s27 }
 0x162   : > { %611 = vrot.lane.b32.xlu0 %v2081_v42, %s1696_s27 }
 0x164   : > { %613 = vrot.lane.b32.xlu1 %v523_v43, %s1696_s27  ;;  %s1700_s27 = smov 104  }
 0x1c8   : > { %v627_v44 = vpop.permute.xlu0 %626 }
 0x1c9   : > { %v640_v45 = vmax.f32 %v517_v41, %v627_v44  ;;  %v781_v41 = vld [vmem:[%s2765_s3 + $0x240] sm:$0xff] }
 0x1ca   : > { %v629_v46 = vpop.permute.xlu1 %628  ;;  %956 = vmatpush1.msra.mxu1 %v781_v41  ;;  %v814_v41 = vld [vmem:[%s2765_s3 + $0x348] sm:$0xff] }
 0x1cb   : > { %v634_v47 = vsel %vm615_vm5, %v627_v44, %v629_v46  ;;  %648 = vrot.lane.b32.xlu0 %v640_v45, %s1697_s28  ;;  %v713_v44 = vld [vmem:[%s2765_s3 + $0x20] sm:$0xff]  ;;  %v779_v45 = vld [vmem:[%s2765_s3 + $0x230] sm:$0xff]  ;;  %v712_v46 = vld [vmem:[%s2765_s3 + $0x18] sm:$0xff] }
 0x1cc   : > { %v641_v48 = vmax.f32 %v592_v38, %v634_v47  ;;  %v631_v49 = vpop.permute.xlu0 %630  ;;  %v716_v38 = vld [vmem:[%s2765_s3 + $0x38] sm:$0xff]  ;;  %v778_v47 = vld [vmem:[%s2765_s3 + $0x228] sm:$0xff] }
 0x1cd   : > { %v642_v50 = vmax.f32 %v523_v43, %v631_v49  ;;  %v780_v43 = vld [vmem:[%s2765_s3 + $0x238] sm:$0xff]  ;;  %886 = vmatprep.subr.mxu0 %v716_v38  ;;  %v749_v38 = vld [vmem:[%s2765_s3 + $0x140] sm:$0xff] }
 0x1ce   : > { %v633_v51 = vpop.permute.xlu1 %632  ;;  %650 = vrot.lane.b32.xlu1 %v641_v48, %s1697_s28  ;;  %v711_v48 = vld [vmem:[%s2765_s3 + $0x10] sm:$0xff]  ;;  %957 = vmatprep.subr.mxu1 %v780_v43  ;;  %v813_v43 = vld [vmem:[%s2765_s3 + $0x340] sm:$0xff] }
 0x1cf   : > { %v635_v52 = vsel %vm615_vm5, %v631_v49, %v633_v51  ;;  %652 = vrot.lane.b32.xlu0 %v642_v50, %s1697_s28  ;;  %v777_v49 = vld [vmem:[%s2765_s3 + $0x220] sm:$0xff]  ;;  %v710_v50 = vld [vmem:[%s2765_s3 + $0x8] sm:$0xff]  ;;  %958 = vmatpush1.msra.mxu1 %v779_v45  ;;  %v776_v51 = vld [vmem:[%s2765_s3 + $0x218] sm:$0xff] }
 0x1d0   : > { %v643_v53 = vmax.f32 %v598_v40, %v635_v52  ;;  %v715_v40 = vld [vmem:[%s2765_s3 + $0x30] sm:$0xff]  ;;  %v709_v52 = vld [vmem:[%s2765_s3] sm:$0xff]  ;;  %959 = vmatprep.subr.mxu1 %v778_v47  ;;  %v812_v45 = vld [vmem:[%s2765_s3 + $0x338] sm:$0xff] }
 0x1d1   : > { %887 = vmatpush1.msra.mxu0 %v715_v40  ;;  %960 = vmatpush1.msra.mxu1 %v777_v49  ;;  %v748_v40 = vld [vmem:[%s2765_s3 + $0x138] sm:$0xff]  ;;  %v811_v47 = vld [vmem:[%s2765_s3 + $0x330] sm:$0xff] }
 0x1d2   : > { %654 = vrot.lane.b32.xlu1 %v643_v53, %s1697_s28  ;;  %888 = vmatprep.subr.mxu0 %v714_v17  ;;  %v775_v53 = vld [vmem:[%s2765_s3 + $0x210] sm:$0xff]  ;;  %s323_s28 = sand.u32 1, %s1684_s10  }
 0x1d3   : > { %889 = vmatpush1.msra.mxu0 %v713_v44  ;;  %961 = vmatprep.subr.mxu1 %v776_v51  ;;  %v747_v17 = vld [vmem:[%s2765_s3 + $0x130] sm:$0xff]  ;;  %v746_v44 = vld [vmem:[%s2765_s3 + $0x128] sm:$0xff]  ;;  %v608_v51 = vpop.permute.xlu0 %607  ;;  %s324_s14 = scalar_lea.vmem [#allocation2], %s323_s28  ;;  %s1402_s25 = scalar_lea.sflag [#allocation3], %s323_s28 }
 0x1d4   : > { %890 = vmatprep.subr.mxu0 %v712_v46  ;;  %962 = vmatpush1.msra.mxu1 %v775_v53  ;;  %v745_v46 = vld [vmem:[%s2765_s3 + $0x120] sm:$0xff]  ;;  %v743_v49 = vld [vmem:[%s2765_s3 + $0x110] sm:$0xff]  ;;  %s1414_s16 = sshll.u32 %s324_s14, 4  ;;  %s1415_s16 = int_to_ptr.vmem [resolvable:$true] %s1414_s16 }
 0x1d5   : > { %891 = vmatpush1.msra.mxu0 %v711_v48  ;;  %963 = vmatprep.subr.mxu1 %v774_v55  ;;  %v744_v48 = vld [vmem:[%s2765_s3 + $0x118] sm:$0xff] }
 0x1d6   : > { %892 = vmatprep.subr.mxu0 %v710_v50  ;;  %964 = vmatpush1.msra.mxu1 %v773_v57  ;;  %v742_v50 = vld [vmem:[%s2765_s3 + $0x108] sm:$0xff] }
 0x1d7   : > { %893 = vmatpush1.msra.mxu0 %v709_v52  ;;  %965 = vmatprep.subr.mxu1 %v836_v59  ;;  %v610_v52 = vpop.permute.xlu1 %609  ;;  %v612_v53 = vpop.permute.xlu0 %611 }
 0x1d8   : > { %894 = vmatprep.subr.mxu0 %v772_v54  ;;  %966 = vmatpush2.msra.mxu1 %v835_v61  ;;  %v616_v55 = vsel %vm615_vm5, %v608_v51, %v610_v52  ;;  %v843_v51 = vld [vmem:[%s2765_s3 + $0x430] sm:$0xff]  ;;  %v842_v52 = vld [vmem:[%s2765_s3 + $0x428] sm:$0xff] }
 0x1d9   : > { %895 = vmatpush2.msra.mxu0 %v771_v56  ;;  %967 = vmatprep.subr.mxu1 %v834_v63  ;;  %v620_v57 = vmax.f32 %v2078_v16, %v616_v55  ;;  %v741_v63 = vld [vmem:[%s2765_s3 + $0x100] sm:$0xff]  ;;  %v839_v55 = vld [vmem:[%s2765_s3 + $0x410] sm:$0xff] }
 0x1da   : > { %896 = vmatprep.subr.mxu0 %v770_v58  ;;  %968 = vmatpush2.msra.mxu1 %v833_v1  ;;  %v809_v16 = vld [vmem:[%s2765_s3 + $0x320] sm:$0xff]  ;;  %v858_v1 = vld [vmem:[%s2765_s3 + $0x4a8] sm:$0xff] }
 0x1db   : > { %897 = vmatpush2.msra.mxu0 %v769_v60  ;;  %969 = vmatprep.subr.mxu1 %v832_v3  ;;  %v614_v54 = vpop.permute.xlu1 %613  ;;  %v1479_v60 = vld [vmem:[%s2764_s2] ss:$0 sm:$0xff] }
 0x1dc   : > { %898 = vmatprep.subr.mxu0 %v768_v62  ;;  %970 = vmatpush2.msra.mxu1 %v831_v5  ;;  %v617_v59 = vsel %vm615_vm5, %v612_v53, %v614_v54  ;;  %v841_v53 = vld [vmem:[%s2765_s3 + $0x420] sm:$0xff]  ;;  %v840_v54 = vld [vmem:[%s2765_s3 + $0x418] sm:$0xff] }
 0x1dd   : > { %899 = vmatpush2.msra.mxu0 %v767_v0  ;;  %971 = vmatprep.subr.mxu1 %v830_v7  ;;  %v810_v0 = vld [vmem:[%s2765_s3 + $0x328] sm:$0xff] }
 0x1de   : > { %900 = vmatprep.subr.mxu0 %v766_v2  ;;  %972 = vmatpush2.msra.mxu1 %v829_v9  ;;  %v621_v2 = vmax.f32 %v2081_v42, %v617_v59  ;;  %v806_v42 = vld [vmem:[%s2765_s3 + $0x308] sm:$0xff] }
 0x1df   : > { %901 = vmatpush2.msra.mxu0 %v765_v4  ;;  %973 = vmatprep.subr.mxu1 %v828_v11 }
 0x1e0   : > { %902 = vmatprep.subr.mxu0 %v764_v6  ;;  %974 = vmatpush2.msra.mxu1 %v827_v13  ;;  %v808_v6 = vld [vmem:[%s2765_s3 + $0x318] sm:$0xff] }
 0x1e1   : > { %903 = vmatpush2.msra.mxu0 %v763_v8  ;;  %975 = vmatprep.subr.mxu1 %v826_v15  ;;  %v807_v8 = vld [vmem:[%s2765_s3 + $0x310] sm:$0xff] }
 0x1e2   : > { %904 = vmatprep.subr.mxu0 %v762_v10  ;;  %976 = vmatpush2.msra.mxu1 %v825_v19  ;;  %v805_v10 = vld [vmem:[%s2765_s3 + $0x300] sm:$0xff] }
 0x1e3   : > { %905 = vmatpush2.msra.mxu0 %v761_v12  ;;  %977 = vmatprep.subr.mxu1 %v824_v21 }
 0x1e4   : > { %906 = vmatprep.subr.mxu0 %v760_v14  ;;  %978 = vmatpush2.msra.mxu1 %v823_v23 }
 0x1e5   : > { %907 = vmatpush2.msra.mxu0 %v759_v18  ;;  %979 = vmatprep.subr.mxu1 %v822_v25 }
 0x1e6   : > { %908 = vmatprep.subr.mxu0 %v758_v20  ;;  %980 = vmatpush2.msra.mxu1 %v821_v27 }
 0x1e7   : > { %909 = vmatpush2.msra.mxu0 %v757_v22  ;;  %981 = vmatprep.subr.mxu1 %v820_v29 }
 0x1e8   : > { %910 = vmatprep.subr.mxu0 %v756_v24  ;;  %982 = vmatpush2.msra.mxu1 %v819_v31 }
 0x1e9   : > { %911 = vmatpush2.msra.mxu0 %v755_v26  ;;  %983 = vmatprep.subr.mxu1 %v818_v33  ;;  %v856_v33 = vld [vmem:[%s2765_s3 + $0x498] sm:$0xff] }
 0x1ea   : > { %912 = vmatprep.subr.mxu0 %v754_v28  ;;  %984 = vmatpush2.msra.mxu1 %v817_v35 }
 0x1eb   : > { %913 = vmatpush2.msra.mxu0 %v753_v30  ;;  %985 = vmatprep.subr.mxu1 %v816_v37  ;;  %v854_v37 = vld [vmem:[%s2765_s3 + $0x488] sm:$0xff] }
 0x1ec   : > { %914 = vmatprep.subr.mxu0 %v752_v32  ;;  %986 = vmatpush2.msra.mxu1 %v815_v39  ;;  %v857_v32 = vld [vmem:[%s2765_s3 + $0x4a0] sm:$0xff] }
 0x1ed   : > { %915 = vmatpush2.msra.mxu0 %v751_v34  ;;  %987 = vmatprep.subr.mxu1 %v814_v41  ;;  %v855_v34 = vld [vmem:[%s2765_s3 + $0x490] sm:$0xff]  ;;  %v853_v41 = vld [vmem:[%s2765_s3 + $0x480] sm:$0xff] }
 0x1ee   : > { %916 = vmatprep.subr.mxu0 %v750_v36  ;;  %988 = vmatpush2.msra.mxu1 %v813_v43  ;;  %v851_v43 = vld [vmem:[%s2765_s3 + $0x470] sm:$0xff] }
 0x1ef   : > { %917 = vmatpush2.msra.mxu0 %v749_v38  ;;  %989 = vmatprep.subr.mxu1 %v812_v45  ;;  %v1701_v38 = vmov 0.0   ;;  %v849_v45 = vld [vmem:[%s2765_s3 + $0x460] sm:$0xff] }
 0x1f0   : > { %918 = vmatprep.subr.mxu0 %v748_v40  ;;  %990 = vmatpush2.msra.mxu1 %v811_v47  ;;  %v847_v47 = vld [vmem:[%s2765_s3 + $0x450] sm:$0xff] }
 0x1f1   : > { %919 = vmatpush2.msra.mxu0 %v747_v17  ;;  %991 = vmatprep.subr.mxu1 %v810_v0  ;;  %v852_v17 = vld [vmem:[%s2765_s3 + $0x478] sm:$0xff] }
 0x1f2   : > { %920 = vmatprep.subr.mxu0 %v746_v44  ;;  %992 = vmatpush2.msra.mxu1 %v809_v16  ;;  %v850_v44 = vld [vmem:[%s2765_s3 + $0x468] sm:$0xff] }
 0x1f3   : > { %921 = vmatpush2.msra.mxu0 %v745_v46  ;;  %993 = vmatprep.subr.mxu1 %v808_v6  ;;  %v848_v46 = vld [vmem:[%s2765_s3 + $0x458] sm:$0xff]  ;;  %v1130_v6 = vld [vmem:[%s2767_s5 + $0x70] sm:$0xff] }
 0x1f4   : > { %922 = vmatprep.subr.mxu0 %v744_v48  ;;  %994 = vmatpush2.msra.mxu1 %v807_v8  ;;  %v846_v48 = vld [vmem:[%s2765_s3 + $0x448] sm:$0xff] }
 0x1f5   : > { %923 = vmatpush2.msra.mxu0 %v743_v49  ;;  %995 = vmatprep.subr.mxu1 %v806_v42  ;;  %v845_v49 = vld [vmem:[%s2765_s3 + $0x440] sm:$0xff]  ;;  %v1129_v8 = vld [vmem:[%s2767_s5 + $0x68] sm:$0xff] }
 0x1f6   : > { %924 = vmatprep.subr.mxu0 %v742_v50  ;;  %996 = vmatpush2.msra.mxu1 %v805_v10  ;;  %v844_v50 = vld [vmem:[%s2765_s3 + $0x438] sm:$0xff]  ;;  %v1128_v42 = vld [vmem:[%s2767_s5 + $0x60] sm:$0xff] }
 0x1f7   : > { %925 = vmatpush2.msra.mxu0 %v741_v63  ;;  %v1155_v10 = vld [vmem:[%s2767_s5 + $0x138] sm:$0xff] }
 0x1f8   : > { %1014 = vmatprep.subr.mxu0 %v858_v1 }
 0x23d   : > { %v649_v56 = vpop.permute.xlu0 %648 }
 0x240   : > { %v651_v58 = vpop.permute.xlu1 %650 }
 0x241   : > { %v657_v61 = vsel %vm656_vm6, %v649_v56, %v651_v58  ;;  %v653_v4 = vpop.permute.xlu0 %652  ;;  %v838_v56 = vld [vmem:[%s2765_s3 + $0x408] sm:$0xff] }
 0x242   : > { %v661_v62 = vmax.f32 %v620_v57, %v657_v61  ;;  %v837_v57 = vld [vmem:[%s2765_s3 + $0x400] sm:$0xff] }
 0x244   : > { %v670_v3 = vadd.f32 %v1479_v60, %v661_v62  ;;  %v655_v5 = vpop.permute.xlu1 %654 }
 0x245   : > { %v658_v7 = vsel %vm656_vm6, %v653_v4, %v655_v5  ;;  %v1131_v4 = vld [vmem:[%s2767_s5 + $0x78] sm:$0xff]  ;;  %v1146_v5 = vld [vmem:[%s2767_s5 + $0xf0] sm:$0xff] }
 0x246   : > { %v662_v9 = vmax.f32 %v621_v2, %v658_v7  ;;  %v672_v11 = vmax.f32 %v670_v3, 0.0  ;;  %v1147_v3 = vld [vmem:[%s2767_s5 + $0xf8] sm:$0xff]  ;;  %v1145_v7 = vld [vmem:[%s2767_s5 + $0xe8] sm:$0xff] }
 0x247   : > { %1489 = vmatprep.subr.mxu1 %v1147_v3  ;;  %v1302_v3 = vld [vmem:[%s2769_s7 + $0x8] sm:$0xff] }
 0x248   : > { %v671_v12 = vadd.f32 %v1479_v60, %v662_v9  ;;  %v682_v14 = vrot.slane %v672_v11, 2  ;;  %v676_v18 = vrot.slane %v672_v11, 1  ;;  %v696_v24 = vrot.slane %v672_v11, 4  ;;  %v1144_v9 = vld [vmem:[%s2767_s5 + $0xe0] sm:$0xff] }
 0x249   : > { %v689_v25 = vrot.slane %v672_v11, 3 }
 0x24a   : > { %v673_v13 = vmax.f32 %v671_v12, 0.0  ;;  %v1154_v12 = vld [vmem:[%s2767_s5 + $0x130] sm:$0xff] }
 0x24c   : > { %v683_v15 = vrot.slane %v673_v13, 2  ;;  %v677_v19 = vrot.slane %v673_v13, 1  ;;  %v697_v22 = vrot.slane %v673_v13, 4  ;;  %v690_v23 = vrot.slane %v673_v13, 3  ;;  %v1127_v13 = vld [vmem:[%s2767_s5 + $0x58] sm:$0xff] }
 0x24e   : > { %v684_v20 = vsel %vm344_vm1, %v682_v14, %v683_v15  ;;  %v678_v21 = vsel %vm334_vm0, %v676_v18, %v677_v19  ;;  %v698_v26 = vsel %vm695_vm7, %v696_v24, %v697_v22  ;;  %v691_v27 = vsel %vm688_vm8, %v689_v25, %v690_v23  ;;  %v1153_v14 = vld [vmem:[%s2767_s5 + $0x128] sm:$0xff]  ;;  %v1142_v15 = vld [vmem:[%s2767_s5 + $0xd0] sm:$0xff]  ;;  %v1152_v19 = vld [vmem:[%s2767_s5 + $0x120] sm:$0xff] }
 0x24f   : > { %685 = vrot.lane.b32.xlu1 %v684_v20, %s1695_s17  ;;  %679 = vrot.lane.b32.xlu0 %v678_v21, %s1698_s21  ;;  %v1126_v18 = vld [vmem:[%s2767_s5 + $0x50] sm:$0xff]  ;;  %v1141_v20 = vld [vmem:[%s2767_s5 + $0xc8] sm:$0xff]  ;;  %vm1157_vm0 = vcmask 523264   ;;  %vm1111_vm1 = vcmask 654336   ;;  %s1706_s21 = smov [#allocation2]  }
 0x250   : > { %v1125_v21 = vld [vmem:[%s2767_s5 + $0x48] sm:$0xff]  ;;  %v1151_v22 = vld [vmem:[%s2767_s5 + $0x118] sm:$0xff]  ;;  %v1140_v23 = vld [vmem:[%s2767_s5 + $0xc0] sm:$0xff] }
 0x251   : > { %v1124_v24 = vld [vmem:[%s2767_s5 + $0x40] sm:$0xff]  ;;  %v1150_v25 = vld [vmem:[%s2767_s5 + $0x110] sm:$0xff] }
 0x253   : > { %699 = vrot.lane.b32.xlu1 %v698_v26, %s1699_s26  ;;  %692 = vrot.lane.b32.xlu0 %v691_v27, %s1700_s27  ;;  %s1702_s26 = smov 48   ;;  %v1139_v26 = vld [vmem:[%s2767_s5 + $0xb8] sm:$0xff] }
 0x254   : > { %v1123_v27 = vld [vmem:[%s2767_s5 + $0x38] sm:$0xff] }
 0x2c1   : > { %v686_v28 = vpop.permute.xlu1 %685  ;;  %v680_v29 = vpop.permute.xlu0 %679 }
 0x2c2   : > { %v703_v30 = vsel %vm702_vm9, %v672_v11, %v680_v29  ;;  %v704_v31 = vsel %vm357_vm4, %v680_v29, %v686_v28  ;;  %v1143_v11 = vld [vmem:[%s2767_s5 + $0xd8] sm:$0xff]  ;;  %v1122_v29 = vld [vmem:[%s2767_s5 + $0x30] sm:$0xff] }
 0x2c3   : > { %926 = vmatprep.mubr.f32.mxu0 %v704_v31  ;;  %v1121_v31 = vld [vmem:[%s2767_s5 + $0x28] sm:$0xff] }
 0x2c4   : > { %927 = vmatmul.mubr.f32.vlgmr.msra.gmra.mxu0 %v703_v30  ;;  %v1137_v30 = vld [vmem:[%s2767_s5 + $0xa8] sm:$0xff] }
 0x2c5   : > { %1015 = vmatpush1.msra.mxu0 %v857_v32  ;;  %v700_v35 = vpop.permute.xlu1 %699  ;;  %v693_v36 = vpop.permute.xlu0 %692  ;;  %1068 = vmatprep.mubr.f32.mxu0 %v1701_v38  ;;  %v1136_v32 = vld [vmem:[%s2767_s5 + $0xa0] sm:$0xff] }
 0x2c6   : > { %1016 = vmatprep.subr.mxu0 %v856_v33  ;;  %v706_v39 = vsel %vm705_vm10, %v686_v28, %v693_v36  ;;  %v708_v40 = vsel %vm707_vm11, %v693_v36, %v700_v35  ;;  %v1138_v28 = vld [vmem:[%s2767_s5 + $0xb0] sm:$0xff]  ;;  %v1120_v33 = vld [vmem:[%s2767_s5 + $0x20] sm:$0xff] }
 0x2c7   : > { %1017 = vmatpush1.msra.mxu0 %v855_v34  ;;  %997 = vmatprep.mubr.f32.mxu1 %v708_v40  ;;  %v1135_v34 = vld [vmem:[%s2767_s5 + $0x98] sm:$0xff]  ;;  %v1134_v40 = vld [vmem:[%s2767_s5 + $0x90] sm:$0xff] }
 0x2c8   : > { %1018 = vmatprep.subr.mxu0 %v854_v37  ;;  %998 = vmatmul.mubr.f32.vlgmr.msra.gmra.mxu1 %v706_v39  ;;  %v1481_v37 = vld [vmem:[%s2766_s4] ss:$0 sm:$0xff] }
 0x2c9   : > { %1019 = vmatpush1.msra.mxu0 %v853_v41  ;;  %1490 = vmatpush3.msra.mxu1 %v1131_v4  ;;  %v1301_v4 = vld [vmem:[%s2769_s7] sm:$0xff] }
 0x2ca   : > { %1020 = vmatprep.subr.mxu0 %v852_v17  ;;  %1491 = vmatprep.subr.mxu1 %v1146_v5  ;;  %v1118_v17 = vld [vmem:[%s2767_s5 + $0x10] sm:$0xff] }
 0x2cb   : > { %1021 = vmatpush1.msra.mxu0 %v851_v43  ;;  %1492 = vmatpush3.msra.mxu1 %v1130_v6  ;;  %v1149_v43 = vld [vmem:[%s2767_s5 + $0x108] sm:$0xff] }
 0x2cc   : > { %1022 = vmatprep.subr.mxu0 %v850_v44  ;;  %1493 = vmatprep.subr.mxu1 %v1145_v7  ;;  %v1133_v44 = vld [vmem:[%s2767_s5 + $0x88] sm:$0xff] }
 0x2cd   : > { %1023 = vmatpush1.msra.mxu0 %v849_v45  ;;  %1494 = vmatpush3.msra.mxu1 %v1129_v8  ;;  %v1156_v8 = vld [vmem:[%s2768_s6] sm:$0x1] }
 0x2ce   : > { %1024 = vmatprep.subr.mxu0 %v848_v46  ;;  %1495 = vmatprep.subr.mxu1 %v1144_v9  ;;  %v1117_v46 = vld [vmem:[%s2767_s5 + $0x8] sm:$0xff] }
 0x2cf   : > { %1025 = vmatpush1.msra.mxu0 %v847_v47  ;;  %1496 = vmatpush3.msra.mxu1 %v1128_v42  ;;  %v1148_v47 = vld [vmem:[%s2767_s5 + $0x100] sm:$0xff] }
 0x2d0   : > { %1026 = vmatprep.subr.mxu0 %v846_v48  ;;  %1497 = vmatprep.subr.mxu1 %v1143_v11 }
 0x2d1   : > { %1027 = vmatpush1.msra.mxu0 %v845_v49  ;;  %1498 = vmatpush3.msra.mxu1 %v1127_v13  ;;  %v1132_v49 = vld [vmem:[%s2767_s5 + $0x80] sm:$0xff] }
 0x2d2   : > { %1028 = vmatprep.subr.mxu0 %v844_v50  ;;  %1499 = vmatprep.subr.mxu1 %v1142_v15  ;;  %v1116_v50 = vld [vmem:[%s2767_s5] sm:$0xff] }
 0x2d3   : > { %1029 = vmatpush1.msra.mxu0 %v843_v51  ;;  %1500 = vmatpush3.msra.mxu1 %v1126_v18 }
 0x2d4   : > { %1030 = vmatprep.subr.mxu0 %v842_v52  ;;  %1501 = vmatprep.subr.mxu1 %v1141_v20 }
 0x2d5   : > { %1031 = vmatpush1.msra.mxu0 %v841_v53  ;;  %1502 = vmatpush3.msra.mxu1 %v1125_v21 }
 0x2d6   : > { %1032 = vmatprep.subr.mxu0 %v840_v54  ;;  %1503 = vmatprep.subr.mxu1 %v1140_v23 }
 0x2d7   : > { %1033 = vmatpush1.msra.mxu0 %v839_v55  ;;  %1504 = vmatpush3.msra.mxu1 %v1124_v24 }
 0x2d8   : > { %1034 = vmatprep.subr.mxu0 %v838_v56  ;;  %1505 = vmatprep.subr.mxu1 %v1139_v26 }
 0x2d9   : > { %1035 = vmatpush1.msra.mxu0 %v837_v57  ;;  %1506 = vmatpush3.msra.mxu1 %v1123_v27 }
 0x2da   : > { %1480 = vmatmul.mubr.msk.f32.vlgmr.msra.gmra.mxu0 %vm859_vm12, %v700_v35  ;;  %1541 = vmatprep.subr.mxu0 %v1701_v38  ;;  %v1119_v35 = vld [vmem:[%s2767_s5 + $0x18] sm:$0xff] }
 0x2db   : > { %1542 = vmatpush3.msra.mxu0 %v1155_v10  ;;  %1507 = vmatprep.subr.mxu1 %v1138_v28 }
 0x2dc   : > { %1543 = vmatprep.subr.mxu0 %v1701_v38  ;;  %1508 = vmatpush3.msra.mxu1 %v1122_v29 }
 0x2dd   : > { %1544 = vmatpush3.msra.mxu0 %v1154_v12  ;;  %1509 = vmatprep.subr.mxu1 %v1137_v30 }
 0x2de   : > { %1545 = vmatprep.subr.mxu0 %v1701_v38  ;;  %1510 = vmatpush3.msra.mxu1 %v1121_v31 }
 0x2df   : > { %1546 = vmatpush3.msra.mxu0 %v1153_v14  ;;  %1511 = vmatprep.subr.mxu1 %v1136_v32 }
 0x2e0   : > { %1547 = vmatprep.subr.mxu0 %v1701_v38  ;;  %1512 = vmatpush3.msra.mxu1 %v1120_v33 }
 0x2e1   : > { %1548 = vmatpush3.msra.mxu0 %v1152_v19  ;;  %1513 = vmatprep.subr.mxu1 %v1135_v34 }
 0x2e2   : > { %1549 = vmatprep.subr.mxu0 %v1701_v38  ;;  %1514 = vmatpush3.msra.mxu1 %v1119_v35 }
 0x2e3   : > { %1550 = vmatpush3.msra.mxu0 %v1151_v22  ;;  %1515 = vmatprep.subr.mxu1 %v1134_v40 }
 0x2e4   : > { %1551 = vmatprep.subr.mxu0 %v1701_v38  ;;  %1516 = vmatpush3.msra.mxu1 %v1118_v17 }
 0x2e5   : > { %1552 = vmatpush3.msra.mxu0 %v1150_v25  ;;  %1517 = vmatprep.subr.mxu1 %v1133_v44 }
 0x2e6   : > { %1553 = vmatprep.subr.mxu0 %v1701_v38  ;;  %1518 = vmatpush3.msra.mxu1 %v1117_v46 }
 0x2e7   : > { %1554 = vmatpush3.msra.mxu0 %v1149_v43  ;;  %1557 = vmatprep.mubr.msk.f32.mxu0 %vm1703_vm14, %v1701_v38 }
 0x2e8   : > { %1555 = vmatprep.subr.mxu0 %v1701_v38  ;;  %1519 = vmatprep.subr.mxu1 %v1132_v49 }
 0x2e9   : > { %1556 = vmatpush3.msra.mxu0 %v1148_v47  ;;  %1520 = vmatpush3.msra.mxu1 %v1116_v50 }
 0x2ea   : > { %1560 = vmatprep.subr.mxu1 %v1701_v38 }
 0x384   : > { %v928_v58 = vpop.f32.mrf.mxu0 }
 0x386   : > { %v930_v60 = vpop.f32.mrf.mxu0 }
 0x388   : > { %v999_v59 = vpop.f32.mrf.mxu1 }
 0x389   : > { %v1000_v62 = vadd.f32 %v999_v59, %v928_v58 }
 0x38a   : > { %v1001_v61 = vpop.f32.mrf.mxu1 }
 0x38b   : > { %v1002_v0 = vadd.f32 %v1001_v61, %v930_v60 }
 0x39a   : > { %v1070_v63 = vpop.f32.mrf.mxu0 }
 0x39b   : > { %v2551_v16 = vadd.f32 %v1070_v63, %v1000_v62  ;;  %v1307_v63 = vld [vmem:[%s2769_s7 + $0x30] sm:$0x3] }
 0x39c   : > { %v1072_v1 = vpop.f32.mrf.mxu0 }
 0x39d   : > { %v1073_v2 = vadd.f32 %v1072_v1, %v1002_v0  ;;  %1077 = vrot.lane.b32.xlu0 %v2551_v16, %s1702_s26  ;;  %v1306_v0 = vld [vmem:[%s2769_s7 + $0x28] sm:$0xff]  ;;  %v1304_v1 = vld [vmem:[%s2769_s7 + $0x18] sm:$0xff] }
 0x39f   : > { %1079 = vrot.lane.b32.xlu1 %v1073_v2, %s1702_s26  ;;  %v1303_v2 = vld [vmem:[%s2769_s7 + $0x10] sm:$0xff]  ;;  %s1636_s26 = sshll.u32 %s1706_s21, 4  ;;  %s1637_s26 = int_to_ptr.vmem [resolvable:$false] %s1636_s26 }
 0x3a0   : > { %s1638_s13 = scalar_lea.vmem %s1637_s26, 32  ;;  %p1639_p0 = scmp.lt.s32.totalorder %s1415_s16, %s1637_s26 }
 0x40f   : > { %v1078_v36 = vpop.permute.xlu0 %1077 }
 0x411   : > { %v1080_v39 = vpop.permute.xlu1 %1079 }
 0x412   : > { %v1082_v41 = vsel %vm1081_vm13, %v1078_v36, %v1080_v39 }
 0x413   : > { %v1084_v45 = vmax.f32 %v2551_v16, %v1082_v41  ;;  %v1305_v16 = vld [vmem:[%s2769_s7 + $0x20] sm:$0xff] }
 0x415   : > { %v1092_v48 = vadd.f32 %v1481_v37, %v1084_v45 }
 0x417   : > { %v1093_v51 = vmax.f32 %v1092_v48, 0.0 }
 0x419   : > { %v1095_v52 = vrot.slane %v1093_v51, 1 }
 0x41b   : > { %v1097_v53 = vmax.f32 %v1093_v51, %v1095_v52 }
 0x41d   : > { %v1103_v54 = vrot.slane %v1097_v53, 4  ;;  %v1099_v55 = vrot.slane %v1097_v53, 2  ;;  %v1107_v56 = vrot.slane %v1097_v53, 6 }
 0x41f   : > { %1104 = vrot.lane.b32.xlu1 %v1103_v54, %s1704_s22  ;;  %1100 = vrot.lane.b32.xlu0 %v1099_v55, %s1705_s23 }
 0x423   : > { %1108 = vrot.lane.b32.xlu0 %v1107_v56, %s1695_s17  ;;  %s1632_s17 = scalar_lea.vmem %s1415_s16, 16 }
 0x424   : > { %p1633_p11 = scmp.ne.s32.totalorder %s1415_s16, %s1632_s17  ;;  %p1640_p1 = scmp.lt.s32.totalorder %s1638_s13, %s1632_s17 }
 0x426   : > { %p1634_p12 = pnand %p1633_p11, %p1795_p5  ;;  %p1641_p2 = por %p1640_p1, %p1639_p0 }
 0x428   : > { %p1635_p13 = pneg %p1634_p12 }
 0x42a   : > { %p1642_p3 = pnand %p1641_p2, %p1635_p13 }
 0x491   : > { %v1101_v57 = vpop.permute.xlu0 %1100  ;;  %v1105_v58 = vpop.permute.xlu1 %1104 }
 0x492   : > { %v1114_v59 = vsel %vm1113_vm15, %v1101_v57, %v1105_v58  ;;  %v1112_v62 = vsel %vm1111_vm1, %v1097_v53, %v1101_v57 }
 0x495   : > { %v1109_v60 = vpop.permute.xlu0 %1108 }
 0x496   : > { %1558 = vmatmul.mubr.msk.f32.vlgmr.msra.gmra.mxu0 %vm1157_vm0, %v1109_v60  ;;  %v1115_v61 = vsel %vm357_vm4, %v1114_v59, %v1109_v60  ;;  %vm1387_vm4 = vcmask 73728  }
 0x497   : > { %1224 = vmatprep.mubr.f32.mxu1 %v1115_v61 }
 0x498   : > { %1225 = vmatmul.mubr.f32.vlgmr.msra.gmra.mxu1 %v1112_v62 }
 0x499   : > { %1574 = vmatprep.mubr.msk.f32.mxu1 %vm1703_vm14, %v1701_v38  ;;  %1561 = vmatpush3.msk.msra.mxu1 %vm1313_vm2, %v1307_v63 }
 0x49a   : > { %1562 = vmatprep.subr.mxu1 %v1701_v38 }
 0x49b   : > { %1563 = vmatpush3.msra.mxu1 %v1306_v0 }
 0x49c   : > { %1564 = vmatprep.subr.mxu1 %v1701_v38 }
 0x49d   : > { %1565 = vmatpush3.msra.mxu1 %v1305_v16 }
 0x49e   : > { %1566 = vmatprep.subr.mxu1 %v1701_v38 }
 0x49f   : > { %1567 = vmatpush3.msra.mxu1 %v1304_v1 }
 0x4a0   : > { %1568 = vmatprep.subr.mxu1 %v1701_v38 }
 0x4a1   : > { %1569 = vmatpush3.msra.mxu1 %v1303_v2 }
 0x4a2   : > { %1570 = vmatprep.subr.mxu1 %v1701_v38 }
 0x4a3   : > { %1571 = vmatpush3.msra.mxu1 %v1302_v3 }
 0x4a4   : > { %1572 = vmatprep.subr.mxu1 %v1701_v38  ;;  %v1308_v38 = vld [vmem:[%s2770_s8] sm:$0x1] }
 0x4a5   : > { %1573 = vmatpush3.msra.mxu1 %v1301_v4 }
 0x556   : > { %v1296_v5 = vpop.f32.mrf.mxu0 }
 0x558   : > { %v1521_v6 = vpop.f32.mrf.mxu1  ;;  %v1559_v7 = vpop.f32.mrf.mxu0 }
 0x55a   : > { %v1522_v9 = vpop.f32.mrf.mxu1 }
 0x55b   : > { %v1523_v42 = vadd.f32 %v1522_v9, %v1521_v6 }
 0x55d   : > { %v1227_v10 = vadd.f32 %v1523_v42, %v1156_v8 }
 0x55f   : > { %v1297_v11 = vadd.f32 %v1296_v5, %v1227_v10 }
 0x561   : > { %v1300_v12 = vmax.f32 %v1297_v11, 0.0 }
 0x563   : > { %1575 = vmatmul.mubr.msk.f32.vlgmr.msra.gmra.mxu1 %vm1309_vm3, %v1300_v12 }
 0x623   : > { %v1383_v13 = vpop.f32.mrf.mxu1 }
 0x624   : > { %v1384_v14 = vadd.f32 %v1383_v13, %v1308_v38 }
 0x625   : > { %v1576_v15 = vpop.f32.mrf.mxu1 }
 0x626   : > { %v1388_v18 = vsel %vm1387_vm4, %v1384_v14, -inf }
 0x627   : > { %1389 = vmax.xlane.f32.xlu1 %v1388_v18 }
 0x6b0   : > { %v1390_v19 = vpop.xlane.xlu1 %1389 }
 0x6b1   : > { %v1391_v20 = vsub.f32 %v1384_v14, %v1390_v19 }
 0x6b3   : > { %v1392_v21 = vmul.f32 1.442695, %v1391_v20 }
 0x6b5   : > { %1628 = vpow2.f32 %v1392_v21 }
 0x6c2   : > { %v1629_v22 = vpop.eup %1628 }
 0x6c3   : > { %v1394_v23 = vsel %vm1387_vm4, %v1629_v22, 0.0 }
 0x6c4   : > { %1395 = vadd.xlane.f32.xlu0 %v1394_v23 }
 0x74d   : > { %v1396_v24 = vpop.xlane.xlu0 %1395 }
 0x74e   : > { %1630 = vlog2.f32 %v1396_v24 }
 0x75b   : > { %v1631_v25 = vpop.eup %1630 }
 0x75c   : > { %v1398_v26 = vmul.f32 0.6931472, %v1631_v25 }
 0x75e   : > { %v1399_v27 = vsub.f32 %v1391_v20, %v1398_v26 }
 0x760   : > { %1400 = vst.msk [vmem:[%s324_s14] sm:$0x1] %vm1387_vm4, %v1399_v27 }
 0x761   : > { %1645 = shalt.err (!%p1642_p3)
}
 0x762   : > { %s1646_s27 = scalar_lea.hbm %s1412_s24, 16  ;;  %s1650_s14 = scalar_lea.hbm %s2771_s9, 32 }
 0x763   : > { %p1647_p4 = scmp.ne.s32.totalorder %s1412_s24, %s1646_s27  ;;  %p1651_p9 = scmp.lt.s32.totalorder %s1412_s24, %s2771_s9 }
 0x764   : > { %p1652_p10 = scmp.lt.s32.totalorder %s1650_s14, %s1646_s27 }
 0x765   : > { %p1648_p7 = pnand %p1647_p4, %p1795_p5 }
 0x766   : > { %p1653_p11 = por %p1652_p10, %p1651_p9 }
 0x767   : > { %p1649_p8 = pneg %p1648_p7 }
 0x769   : > { %p1654_p12 = pnand %p1653_p11, %p1649_p8 }
 0x76b   : > { %1657 = shalt.err (!%p1654_p12)
}
 0x76c   : > { %1577 = dma.vmem_to_hbm [thread:$0]  (%p1795_p5), %s1415_s16, 16, %s1412_s24, %s1402_s25  }
 0x76d PF: > { %p1583_p13 = scmp.ge.s32.totalorder %s1692_s12, 2  ;;  %s1426_s17 = sand.u32 1, %s1680_s30  }
 0x76e   : > { %s1427_s21 = scalar_lea.sflag [#allocation3], %s1426_s17 }
 0x76f   : > { %p1580_p0 = pnand %p1583_p13, %p1799_p6 }
 0x771   : > { %p1581_p1 = pneg %p1580_p0 }
 0x773   : > { %1675 = dma.done.wait (%p1581_p1), %s1427_s21, 16  }
 0x774   : > { %1677 = vsyncadd (%p1581_p1), %s1427_s21, 4294967280  ;;  %p19_p2 = scmp.ge.s32.totalorder %s1782_s15, 4   ;;  %s2774_s30 = smov %s1684_s10 }
 0x775   : > { %s2775_s10 = smov %s1688_s11  ;;  %s2776_s11 = smov %s1793_s18 }
 0x776   : > { %s2777_s12 = smov %s1782_s15  ;;  %21 = sbr.rel (!%p19_p2) target bundleno = 3 (0x3), region = 91 }
 0x77b   :  { %1431 = vsyncpa [#allocation3], 1 }
 0x77c   :  { %1433 = vsyncpa [#allocation3 + $0x1], 1 }

</bundles_post_ra>
